<compile_context>
chip_gen: v6e
topology: v6e:2x2x1
jax: 0.10.0
libtpu: 0.0.40
codegen_flags: <defaults>
</compile_context>

<pallas_src>
import functools

import jax
import jax.numpy as jnp
from jax import lax
from jax.experimental import pallas as pl
from jax.experimental.pallas import tpu as pltpu


def _grid_sample_affine_kernel(theta_smem, grid_ref, img_ref, out_ref, *,
                               S, K, align_corners):
    """One (batch n, m-tile) step: out_ref[0] = img(C,K) @ ST(K,TM)."""
    n = pl.program_id(0)
    t00 = theta_smem[n, 0]; t01 = theta_smem[n, 1]; t02 = theta_smem[n, 2]
    t10 = theta_smem[n, 3]; t11 = theta_smem[n, 4]; t12 = theta_smem[n, 5]

    # ---- theta application on the (theta-invariant, precomputed) normalized grid ----
    x_n = grid_ref[0:1, :]                    # (1, TM)  x / scale per output pixel
    y_n = grid_ref[1:2, :]                    # (1, TM)  y / scale per output pixel
    px = t00 * x_n + t01 * y_n + t02
    py = t10 * x_n + t11 * y_n + t12

    # un-normalize (F.grid_sample convention)
    if align_corners:
        ix = (px + 1.0) * 0.5 * (S - 1)
        iy = (py + 1.0) * 0.5 * (S - 1)
    else:
        ix = ((px + 1.0) * S - 1.0) * 0.5
        iy = ((py + 1.0) * S - 1.0) * 0.5

    x0f = jnp.floor(ix); y0f = jnp.floor(iy)
    wx1 = ix - x0f; wx0 = 1.0 - wx1
    wy1 = iy - y0f; wy0 = 1.0 - wy1
    x0 = x0f.astype(jnp.int32); x1 = x0 + 1
    y0 = y0f.astype(jnp.int32); y1 = y0 + 1

    # bounds masks applied to the WEIGHTS (zeros padding), all (1, TM) -> cheap
    inx0 = (x0 >= 0) & (x0 < S); inx1 = (x1 >= 0) & (x1 < S)
    iny0 = (y0 >= 0) & (y0 < S); iny1 = (y1 >= 0) & (y1 < S)
    w00 = jnp.where(iny0 & inx0, wy0 * wx0, 0.0)
    w01 = jnp.where(iny0 & inx1, wy0 * wx1, 0.0)
    w10 = jnp.where(iny1 & inx0, wy1 * wx0, 0.0)
    w11 = jnp.where(iny1 & inx1, wy1 * wx1, 0.0)

    # packed input-pixel indices of the 4 corners (no row/col div/mod)
    idx00 = y0 * S + x0
    idx01 = idx00 + 1
    idx10 = idx00 + S
    idx11 = idx00 + S + 1

    tm = out_ref.shape[-1]
    k_ids = lax.broadcasted_iota(jnp.int32, (K, tm), 0)   # input pixel index on sublanes

    # The four packed corner indices of one output pixel are always distinct
    # (pairwise differences 1, S-1, S, S+1 != 0 for S >= 2), so a nested select
    # sums the contributions correctly with no zeros-init and no adds.
    st = jnp.where(k_ids == idx00, w00,
         jnp.where(k_ids == idx01, w01,
         jnp.where(k_ids == idx10, w10,
         jnp.where(k_ids == idx11, w11, 0.0))))           # (K, TM) f32

    img = img_ref[0].astype(jnp.float32)                  # (C, K), resident across m
    out = jnp.dot(img, st, preferred_element_type=jnp.float32)
    out_ref[0] = out.astype(out_ref.dtype)


def geometric_tnf_affine(images, theta, scale_factor=1.0, align_corners=False,
                         tile_m=512):
    """images: (N, C, H, W) float32, theta: (N, 2, 3) float32 -> (N, C, H, W)."""
    N, C, H, W = images.shape
    assert H == W, "reference module implicitly requires h == w"
    S = H
    assert S >= 2, "degenerate grid (linspace needs S >= 2)"
    K = S * S

    # Lane-dense output: pad the flattened output spatial axis to a multiple of 128.
    M_pad = ((K + 127) // 128) * 128
    # Largest multiple of 128 <= tile_m that evenly divides M_pad.
    TM = 128
    t = 128
    while t <= min(tile_m, M_pad):
        if M_pad % t == 0:
            TM = t
        t += 128
    num_m = M_pad // TM

    img_flat = images.reshape(N, C, K)
    theta_flat = theta.reshape(N, 6).astype(jnp.float32)

    # ---- theta-invariant sampling grid, hoisted out of the kernel (computed once) ----
    # Because of transpose(0,-1) in the reference __init__, first output axis -> x linspace,
    # second output axis -> y linspace.
    m_ids = jnp.arange(M_pad, dtype=jnp.int32)
    i_idx = (m_ids // S).astype(jnp.float32)
    j_idx = (m_ids % S).astype(jnp.float32)
    x_n = (-1.0 + 2.0 * i_idx / (S - 1)) / scale_factor
    y_n = (-1.0 + 2.0 * j_idx / (S - 1)) / scale_factor
    grid_xy = jnp.stack([x_n, y_n]).astype(jnp.float32)   # (2, M_pad)

    kernel = functools.partial(_grid_sample_affine_kernel, S=S, K=K,
                               align_corners=align_corners)

    itemsize = jnp.dtype(images.dtype).itemsize
    est_bytes = (3 * K * TM * 4            # ST slab + build temporaries
                 + 2 * C * K * itemsize    # double-buffered image block
                 + 2 * C * TM * itemsize   # double-buffered output block
                 + 4 * TM * 4)             # grid block
    vmem_limit = int(min(64 * 1024 * 1024, max(32 * 1024 * 1024, 2 * est_bytes)))

    out = pl.pallas_call(
        kernel,
        out_shape=jax.ShapeDtypeStruct((N, C, M_pad), images.dtype),
        grid_spec=pltpu.PrefetchScalarGridSpec(
            num_scalar_prefetch=1,            # theta lives in SMEM
            grid=(N, num_m),
            in_specs=[
                # normalized grid slab for this m-tile
                pl.BlockSpec((2, TM), lambda n, m, th: (0, m)),
                # full image block, resident across the m axis
                pl.BlockSpec((1, C, K), lambda n, m, th: (n, 0, 0)),
            ],
            out_specs=pl.BlockSpec((1, C, TM), lambda n, m, th: (n, 0, m)),
        ),
        compiler_params=pltpu.CompilerParams(
            dimension_semantics=("parallel", "arbitrary"),
            vmem_limit_bytes=vmem_limit),
    )(theta_flat, grid_xy, img_flat)

    return out[:, :, :K].reshape(N, C, S, S)


# ---------------- pure-JAX reference (gather formulation) for verification ----------------
def _reference(images, theta, scale_factor=1.0, align_corners=False):
    N, C, H, W = images.shape
    S = H
    lin = jnp.linspace(-1.0, 1.0, S)
    x_n = jnp.broadcast_to(lin[:, None], (S, S)) / scale_factor   # varies along axis 0
    y_n = jnp.broadcast_to(lin[None, :], (S, S)) / scale_factor   # varies along axis 1
    t = theta.reshape(N, 2, 3)
    px = t[:, 0, 0, None, None] * x_n + t[:, 0, 1, None, None] * y_n + t[:, 0, 2, None, None]
    py = t[:, 1, 0, None, None] * x_n + t[:, 1, 1, None, None] * y_n + t[:, 1, 2, None, None]
    if align_corners:
        ix = (px + 1.0) * 0.5 * (S - 1)
        iy = (py + 1.0) * 0.5 * (S - 1)
    else:
        ix = ((px + 1.0) * S - 1.0) * 0.5
        iy = ((py + 1.0) * S - 1.0) * 0.5
    x0f = jnp.floor(ix); y0f = jnp.floor(iy)
    wx1 = ix - x0f; wx0 = 1.0 - wx1
    wy1 = iy - y0f; wy0 = 1.0 - wy1
    x0 = x0f.astype(jnp.int32); x1 = x0 + 1
    y0 = y0f.astype(jnp.int32); y1 = y0 + 1

    bidx = jnp.arange(N)[:, None, None, None]
    cidx = jnp.arange(C)[None, :, None, None]

    def gather(yy, xx):
        valid = ((yy >= 0) & (yy < S) & (xx >= 0) & (xx < S)).astype(images.dtype)
        yyc = jnp.clip(yy, 0, S - 1)
        xxc = jnp.clip(xx, 0, S - 1)
        vals = images[bidx, cidx, yyc[:, None], xxc[:, None]]
        return vals * valid[:, None]

    out = (wy0 * wx0)[:, None] * gather(y0, x0) + (wy0 * wx1)[:, None] * gather(y0, x1) \
        + (wy1 * wx0)[:, None] * gather(y1, x0) + (wy1 * wx1)[:, None] * gather(y1, x1)
    return out


if __name__ == "__main__":
    key = jax.random.PRNGKey(0)
    k1, k2 = jax.random.split(key)

    N, C, S = 2, 4, 16
    images = jax.random.normal(k1, (N, C, S, S), dtype=jnp.float32)
    # identity affine + small perturbation (rotation/shear/translation)
    base = jnp.broadcast_to(jnp.array([[1.0, 0.0, 0.0], [0.0, 1.0, 0.0]], jnp.float32),
                            (N, 2, 3))
    theta = base + 0.1 * jax.random.normal(k2, (N, 2, 3), dtype=jnp.float32)

    out = geometric_tnf_affine(images, theta, scale_factor=1.0)
    out = jax.block_until_ready(out)

    ref = _reference(images, theta, scale_factor=1.0)
    assert out.shape == (N, C, S, S)
    assert jnp.allclose(out, ref, atol=1e-4, rtol=1e-4), \
        f"max abs err {jnp.max(jnp.abs(out - ref))}"

    print("KERNEL_OK")
</pallas_src>

<mosaic_0001>
module attributes {stable_mosaic.version = 11 : i64} {
  func.func @_grid_sample_affine_kernel(%arg0: i32, %arg1: i32, %arg2: memref<2x6xf32, #tpu.memory_space<smem>>, %arg3: memref<2x256xf32, #tpu.memory_space<vmem>>, %arg4: memref<1x4x256xf32, #tpu.memory_space<vmem>>, %arg5: memref<1x4x256xf32, #tpu.memory_space<vmem>>) attributes {dimension_semantics = [#tpu.dimension_semantics<parallel>, #tpu.dimension_semantics<arbitrary>], iteration_bounds = array<i64: 2, 1>, scalar_prefetch = 1 : i64, scratch_operands = 0 : i64, tpu.core_type = #tpu.core_type<tc>, window_params = [{transform_indices = @transform_0, window_bounds = array<i64: 2, 256>}, {transform_indices = @transform_1, window_bounds = array<i64: 1, 4, 256>}, {transform_indices = @transform_2, window_bounds = array<i64: 1, 4, 256>}]} {
    %0 = arith.index_cast %arg0 : i32 to index
    %c0 = arith.constant 0 : index
    %1 = memref.load %arg2[%0, %c0] : memref<2x6xf32, #tpu.memory_space<smem>>
    %2 = arith.index_cast %arg0 : i32 to index
    %c1 = arith.constant 1 : index
    %3 = memref.load %arg2[%2, %c1] : memref<2x6xf32, #tpu.memory_space<smem>>
    %4 = arith.index_cast %arg0 : i32 to index
    %c2 = arith.constant 2 : index
    %5 = memref.load %arg2[%4, %c2] : memref<2x6xf32, #tpu.memory_space<smem>>
    %6 = arith.index_cast %arg0 : i32 to index
    %c3 = arith.constant 3 : index
    %7 = memref.load %arg2[%6, %c3] : memref<2x6xf32, #tpu.memory_space<smem>>
    %8 = arith.index_cast %arg0 : i32 to index
    %c4 = arith.constant 4 : index
    %9 = memref.load %arg2[%8, %c4] : memref<2x6xf32, #tpu.memory_space<smem>>
    %10 = arith.index_cast %arg0 : i32 to index
    %c5 = arith.constant 5 : index
    %11 = memref.load %arg2[%10, %c5] : memref<2x6xf32, #tpu.memory_space<smem>>
    %c0_0 = arith.constant 0 : index
    %c0_1 = arith.constant 0 : index
    %12 = vector.load %arg3[%c0_0, %c0_1] : memref<2x256xf32, #tpu.memory_space<vmem>>, vector<1x256xf32>
    %c1_2 = arith.constant 1 : index
    %c0_3 = arith.constant 0 : index
    %13 = vector.load %arg3[%c1_2, %c0_3] : memref<2x256xf32, #tpu.memory_space<vmem>>, vector<1x256xf32>
    %14 = vector.broadcast %1 : f32 to vector<1x256xf32>
    %15 = arith.mulf %14, %12 : vector<1x256xf32>
    %16 = vector.broadcast %3 : f32 to vector<1x256xf32>
    %17 = arith.mulf %16, %13 : vector<1x256xf32>
    %18 = arith.addf %15, %17 : vector<1x256xf32>
    %19 = vector.broadcast %5 : f32 to vector<1x256xf32>
    %20 = arith.addf %18, %19 : vector<1x256xf32>
    %21 = vector.broadcast %7 : f32 to vector<1x256xf32>
    %22 = arith.mulf %21, %12 : vector<1x256xf32>
    %23 = vector.broadcast %9 : f32 to vector<1x256xf32>
    %24 = arith.mulf %23, %13 : vector<1x256xf32>
    %25 = arith.addf %22, %24 : vector<1x256xf32>
    %26 = vector.broadcast %11 : f32 to vector<1x256xf32>
    %27 = arith.addf %25, %26 : vector<1x256xf32>
    %cst = arith.constant 1.000000e+00 : f32
    %28 = vector.broadcast %cst : f32 to vector<1x256xf32>
    %29 = arith.addf %20, %28 : vector<1x256xf32>
    %cst_4 = arith.constant 1.600000e+01 : f32
    %30 = vector.broadcast %cst_4 : f32 to vector<1x256xf32>
    %31 = arith.mulf %29, %30 : vector<1x256xf32>
    %cst_5 = arith.constant 1.000000e+00 : f32
    %32 = vector.broadcast %cst_5 : f32 to vector<1x256xf32>
    %33 = arith.subf %31, %32 : vector<1x256xf32>
    %cst_6 = arith.constant 5.000000e-01 : f32
    %34 = vector.broadcast %cst_6 : f32 to vector<1x256xf32>
    %35 = arith.mulf %33, %34 : vector<1x256xf32>
    %cst_7 = arith.constant 1.000000e+00 : f32
    %36 = vector.broadcast %cst_7 : f32 to vector<1x256xf32>
    %37 = arith.addf %27, %36 : vector<1x256xf32>
    %cst_8 = arith.constant 1.600000e+01 : f32
    %38 = vector.broadcast %cst_8 : f32 to vector<1x256xf32>
    %39 = arith.mulf %37, %38 : vector<1x256xf32>
    %cst_9 = arith.constant 1.000000e+00 : f32
    %40 = vector.broadcast %cst_9 : f32 to vector<1x256xf32>
    %41 = arith.subf %39, %40 : vector<1x256xf32>
    %cst_10 = arith.constant 5.000000e-01 : f32
    %42 = vector.broadcast %cst_10 : f32 to vector<1x256xf32>
    %43 = arith.mulf %41, %42 : vector<1x256xf32>
    %44 = math.floor %35 : vector<1x256xf32>
    %45 = math.floor %43 : vector<1x256xf32>
    %46 = arith.subf %35, %44 : vector<1x256xf32>
    %cst_11 = arith.constant 1.000000e+00 : f32
    %47 = vector.broadcast %cst_11 : f32 to vector<1x256xf32>
    %48 = arith.subf %47, %46 : vector<1x256xf32>
    %49 = arith.subf %43, %45 : vector<1x256xf32>
    %cst_12 = arith.constant 1.000000e+00 : f32
    %50 = vector.broadcast %cst_12 : f32 to vector<1x256xf32>
    %51 = arith.subf %50, %49 : vector<1x256xf32>
    %52 = arith.fptosi %44 : vector<1x256xf32> to vector<1x256xi32>
    %c1_i32 = arith.constant 1 : i32
    %53 = vector.broadcast %c1_i32 : i32 to vector<1x256xi32>
    %54 = arith.addi %52, %53 : vector<1x256xi32>
    %55 = arith.fptosi %45 : vector<1x256xf32> to vector<1x256xi32>
    %c1_i32_13 = arith.constant 1 : i32
    %56 = vector.broadcast %c1_i32_13 : i32 to vector<1x256xi32>
    %57 = arith.addi %55, %56 : vector<1x256xi32>
    %c0_i32 = arith.constant 0 : i32
    %58 = vector.broadcast %c0_i32 : i32 to vector<1x256xi32>
    %59 = arith.cmpi sge, %52, %58 : vector<1x256xi32>
    %c16_i32 = arith.constant 16 : i32
    %60 = vector.broadcast %c16_i32 : i32 to vector<1x256xi32>
    %61 = arith.cmpi slt, %52, %60 : vector<1x256xi32>
    %62 = arith.andi %59, %61 : vector<1x256xi1>
    %c0_i32_14 = arith.constant 0 : i32
    %63 = vector.broadcast %c0_i32_14 : i32 to vector<1x256xi32>
    %64 = arith.cmpi sge, %54, %63 : vector<1x256xi32>
    %c16_i32_15 = arith.constant 16 : i32
    %65 = vector.broadcast %c16_i32_15 : i32 to vector<1x256xi32>
    %66 = arith.cmpi slt, %54, %65 : vector<1x256xi32>
    %67 = arith.andi %64, %66 : vector<1x256xi1>
    %c0_i32_16 = arith.constant 0 : i32
    %68 = vector.broadcast %c0_i32_16 : i32 to vector<1x256xi32>
    %69 = arith.cmpi sge, %55, %68 : vector<1x256xi32>
    %c16_i32_17 = arith.constant 16 : i32
    %70 = vector.broadcast %c16_i32_17 : i32 to vector<1x256xi32>
    %71 = arith.cmpi slt, %55, %70 : vector<1x256xi32>
    %72 = arith.andi %69, %71 : vector<1x256xi1>
    %c0_i32_18 = arith.constant 0 : i32
    %73 = vector.broadcast %c0_i32_18 : i32 to vector<1x256xi32>
    %74 = arith.cmpi sge, %57, %73 : vector<1x256xi32>
    %c16_i32_19 = arith.constant 16 : i32
    %75 = vector.broadcast %c16_i32_19 : i32 to vector<1x256xi32>
    %76 = arith.cmpi slt, %57, %75 : vector<1x256xi32>
    %77 = arith.andi %74, %76 : vector<1x256xi1>
    %78 = arith.andi %72, %62 : vector<1x256xi1>
    %79 = arith.mulf %51, %48 : vector<1x256xf32>
    %cst_20 = arith.constant 0.000000e+00 : f32
    %80 = vector.broadcast %cst_20 : f32 to vector<1x256xf32>
    %81 = arith.select %78, %79, %80 : vector<1x256xi1>, vector<1x256xf32>
    %82 = arith.andi %72, %67 : vector<1x256xi1>
    %83 = arith.mulf %51, %46 : vector<1x256xf32>
    %cst_21 = arith.constant 0.000000e+00 : f32
    %84 = vector.broadcast %cst_21 : f32 to vector<1x256xf32>
    %85 = arith.select %82, %83, %84 : vector<1x256xi1>, vector<1x256xf32>
    %86 = arith.andi %77, %62 : vector<1x256xi1>
    %87 = arith.mulf %49, %48 : vector<1x256xf32>
    %cst_22 = arith.constant 0.000000e+00 : f32
    %88 = vector.broadcast %cst_22 : f32 to vector<1x256xf32>
    %89 = arith.select %86, %87, %88 : vector<1x256xi1>, vector<1x256xf32>
    %90 = arith.andi %77, %67 : vector<1x256xi1>
    %91 = arith.mulf %49, %46 : vector<1x256xf32>
    %cst_23 = arith.constant 0.000000e+00 : f32
    %92 = vector.broadcast %cst_23 : f32 to vector<1x256xf32>
    %93 = arith.select %90, %91, %92 : vector<1x256xi1>, vector<1x256xf32>
    %c16_i32_24 = arith.constant 16 : i32
    %94 = vector.broadcast %c16_i32_24 : i32 to vector<1x256xi32>
    %95 = arith.muli %55, %94 : vector<1x256xi32>
    %96 = arith.addi %95, %52 : vector<1x256xi32>
    %c1_i32_25 = arith.constant 1 : i32
    %97 = vector.broadcast %c1_i32_25 : i32 to vector<1x256xi32>
    %98 = arith.addi %96, %97 : vector<1x256xi32>
    %c16_i32_26 = arith.constant 16 : i32
    %99 = vector.broadcast %c16_i32_26 : i32 to vector<1x256xi32>
    %100 = arith.addi %96, %99 : vector<1x256xi32>
    %c16_i32_27 = arith.constant 16 : i32
    %101 = vector.broadcast %c16_i32_27 : i32 to vector<1x256xi32>
    %102 = arith.addi %96, %101 : vector<1x256xi32>
    %c1_i32_28 = arith.constant 1 : i32
    %103 = vector.broadcast %c1_i32_28 : i32 to vector<1x256xi32>
    %104 = arith.addi %102, %103 : vector<1x256xi32>
    %105 = tpu.iota {dimensions = array<i32: 0>} : vector<256x256xi32>
    %106 = vector.broadcast %96 : vector<1x256xi32> to vector<256x256xi32>
    %107 = arith.cmpi eq, %105, %106 : vector<256x256xi32>
    %108 = vector.broadcast %98 : vector<1x256xi32> to vector<256x256xi32>
    %109 = arith.cmpi eq, %105, %108 : vector<256x256xi32>
    %110 = vector.broadcast %100 : vector<1x256xi32> to vector<256x256xi32>
    %111 = arith.cmpi eq, %105, %110 : vector<256x256xi32>
    %112 = vector.broadcast %104 : vector<1x256xi32> to vector<256x256xi32>
    %113 = arith.cmpi eq, %105, %112 : vector<256x256xi32>
    %cst_29 = arith.constant 0.000000e+00 : f32
    %114 = vector.shape_cast %93 : vector<1x256xf32> to vector<1x256xf32>
    %115 = vector.broadcast %114 : vector<1x256xf32> to vector<256x256xf32>
    %116 = vector.broadcast %cst_29 : f32 to vector<256x256xf32>
    %117 = arith.select %113, %115, %116 : vector<256x256xi1>, vector<256x256xf32>
    %118 = vector.shape_cast %89 : vector<1x256xf32> to vector<1x256xf32>
    %119 = vector.broadcast %118 : vector<1x256xf32> to vector<256x256xf32>
    %120 = arith.select %111, %119, %117 : vector<256x256xi1>, vector<256x256xf32>
    %121 = vector.shape_cast %85 : vector<1x256xf32> to vector<1x256xf32>
    %122 = vector.broadcast %121 : vector<1x256xf32> to vector<256x256xf32>
    %123 = arith.select %109, %122, %120 : vector<256x256xi1>, vector<256x256xf32>
    %124 = vector.shape_cast %81 : vector<1x256xf32> to vector<1x256xf32>
    %125 = vector.broadcast %124 : vector<1x256xf32> to vector<256x256xf32>
    %126 = arith.select %107, %125, %123 : vector<256x256xi1>, vector<256x256xf32>
    %c0_30 = arith.constant 0 : index
    %c0_31 = arith.constant 0 : index
    %c0_32 = arith.constant 0 : index
    %127 = vector.load %arg4[%c0_30, %c0_31, %c0_32] : memref<1x4x256xf32, #tpu.memory_space<vmem>>, vector<1x4x256xf32>
    %128 = vector.shape_cast %127 : vector<1x4x256xf32> to vector<4x256xf32>
    %cst_33 = arith.constant dense<0.000000e+00> : vector<4x256xf32>
    %129 = tpu.matmul %128, %126, %cst_33 {dimension_numbers = #tpu.dot_dimension_numbers<[1], [0], [0], [1], [0, 0, 1, 1], [], []>} : vector<4x256xf32>, vector<256x256xf32>, vector<4x256xf32> -> vector<4x256xf32>
    %c0_34 = arith.constant 0 : index
    %c0_35 = arith.constant 0 : index
    %c0_36 = arith.constant 0 : index
    %130 = vector.load %arg5[%c0_34, %c0_35, %c0_36] : memref<1x4x256xf32, #tpu.memory_space<vmem>>, vector<1x4x256xf32>
    %131 = vector.shape_cast %130 : vector<1x4x256xf32> to vector<4x256xf32>
    %132 = vector.shape_cast %129 : vector<4x256xf32> to vector<1x4x256xf32>
    tpu.vector_store %arg5[%c0_34, %c0_35, %c0_36], %132 {strides = array<i32>} : memref<1x4x256xf32, #tpu.memory_space<vmem>>, vector<1x4x256xf32>,
    return
  }
  func.func @transform_0(%arg0: i32, %arg1: i32, %arg2: memref<2x6xf32, #tpu.memory_space<smem>>) -> (i32, i32) {
    %c0_i32 = arith.constant 0 : i32
    %c0_i32_0 = arith.constant 0 : i32
    return %c0_i32, %arg1 : i32, i32
  }
  func.func @transform_1(%arg0: i32, %arg1: i32, %arg2: memref<2x6xf32, #tpu.memory_space<smem>>) -> (i32, i32, i32) {
    %c0_i32 = arith.constant 0 : i32
    %c0_i32_0 = arith.constant 0 : i32
    %c0_i32_1 = arith.constant 0 : i32
    return %arg0, %c0_i32, %c0_i32_0 : i32, i32, i32
  }
  func.func @transform_2(%arg0: i32, %arg1: i32, %arg2: memref<2x6xf32, #tpu.memory_space<smem>>) -> (i32, i32, i32) {
    %c0_i32 = arith.constant 0 : i32
    %c0_i32_0 = arith.constant 0 : i32
    return %arg0, %c0_i32, %arg1 : i32, i32, i32
  }
}

</mosaic_0001>

<bundles_post_ra>
// kernel: tpu_custom_call.1
= control target key start
LH: loop header
LB: loop body
LE: loop exit
PB: predicated region body
PF: predicated region fallthrough
CT: control target
= control target key end

     0   :  { %s1342_s12 = smov [#allocation3]   ;;  %s2621_s0 = inlined_call_operand.hbm [shape: f32[2,6], index: 0, kind: input, shape index: {}]   ;;  %s2622_s1 = inlined_call_operand.hbm [shape: f32[2,256], index: 1, kind: input, shape index: {}]   ;;  %s2623_s2 = inlined_call_operand.hbm [shape: f32[2,4,256], index: 2, kind: input, shape index: {}]   ;;  %s2624_s3 = inlined_call_operand.hbm [shape: f32[2,4,256], index: 3, kind: output, shape index: {}]  }
   0x1   :  { %9 = dma.hbm_to_smem %s2621_s0, 32, %s1342_s12, [#allocation2] }
   0x2   :  { %1304 = dma.done.wait [#allocation2], 32 }
   0x3   :  { %1305 = vsyncadd [#allocation2], 4294967264 }
   0x4   :  { %11 = sfence }
   0x5   :  { %12 = vsyncpa [#allocation5], 0 }
   0x6   :  { %13 = vsyncpa [#allocation8], 0 }
   0x7   :  { %15 = vsyncpa [#allocation8 + $0x1], 0 }
   0x8   :  { %16 = vsyncpa [#allocation6], 0 }
   0x9   :  { %18 = vsyncpa [#allocation6 + $0x1], 0  ;;  %s1369_s15 = smov 0   ;;  %s1371_s16 = smov 0  }
   0xa   :  { %s1373_s17 = smov 0   ;;  %s1375_s18 = smov 0  }
   0xb   :  { %s1377_s19 = smov 0   ;;  %s1379_s20 = smov 0  }
   0xc LB: > { %s1091_s0 = sadd.s32 4294967295, %s1340_s20   ;;  %s1092_s21 = sadd.s32 4294967294, %s1340_s20   ;;  %s1340_s20 = sphi %s1379_s20, %s24_s20   ;;  %s1336_s19 = sphi %s1377_s19, %s2649_s19   ;;  %s1332_s18 = sphi %s1375_s18, %s2648_s18   ;;  %s1328_s17 = sphi %s1373_s17, %s2647_s17   ;;  %s1324_s16 = sphi %s1371_s16, %s2646_s16   ;;  %s1320_s15 = sphi %s1369_s15, %s2645_s15  }
   0xd   : > { %p82_p0 = scmp.ne.s32.totalorder %s1324_s16, %s1320_s15  ;;  %p1403_p1 = scmp.eq.s32.totalorder %s1091_s0, 0 }
   0xe   : > { %p1407_p2 = scmp.eq.s32.totalorder %s1091_s0, 1  ;;  %p114_p3 = scmp.eq.s32.totalorder %s1092_s21, 1 }
   0xf   : > { %p1413_p4 = por %p1403_p1, %p82_p0  ;;  %p1093_p5 = scmp.ge.s32.totalorder %s1340_s20, 1 }
  0x10   : > { %p1418_p6 = por %p114_p3, %p82_p0  ;;  %p121_p7 = scmp.lt.s32.totalorder %s1340_s20, 3 }
  0x11   : > { %s2628_s24 = scalar_select %p1413_p4, 1, 0 }
  0x12   : > { %s2629_s25 = scalar_select %p1418_p6, 1, 0 }
  0x13   : > { %p1423_p8 = pnand %p1093_p5, %p121_p7  ;;  %s1343_s27 = smov [#allocation4]  }
  0x14   : > { %s137_s28 = sshll.u32 %s1343_s27, 4  ;;  %s36_s30 = sadd.s32 1, %s1336_s19  ;;  %s138_s28 = int_to_ptr.vmem [resolvable:$true] %s137_s28 }
  0x15   : > { %p1125_p10 = pneg %p1423_p8  ;;  %s69_s4 = sadd.s32 1, %s1328_s17 }
  0x16   : > { %p38_p12 = scmp.ge.s32.totalorder %s36_s30, 2  ;;  %s1211_s5 = scalar_lea.vmem %s138_s28, 64 }
  0x17   : > { %p1432_p11 = pnand %p1125_p10, %p1403_p1  ;;  %p1212_p0 = scmp.ne.s32.totalorder %s138_s28, %s1211_s5 }
  0x18   : > { %p1219_p7 = scmp.lt.s32.totalorder %s138_s28, %s138_s28  ;;  %p1220_p6 = scmp.lt.s32.totalorder %s1211_s5, %s1211_s5 }
  0x19   : > { %p1202_p13 = pneg %p1432_p11 }
  0x1a   : > { %p1221_p9 = por %p1220_p6, %p1219_p7 }
  0x1b   : > { %p1214_p3 = pnand %p1212_p0, %p1202_p13 }
  0x1d   : > { %p1215_p5 = pneg %p1214_p3 }
  0x1f   : > { %p1222_p4 = pnand %p1221_p9, %p1215_p5 }
  0x21   : > { %1225 = shalt.err (!%p1222_p4)
}
  0x22   : > { %1128 = dma.hbm_to_vmem [thread:$0]  (!%p1432_p11), %s2622_s1, 64, %s138_s28, [#allocation5]  }
  0x23   : > { %s2651_s30 = smov (%p38_p12, %s36_s30), 0  ;;  %p76_p6 = scmp.ne.s32.totalorder %s1328_s17, %s1324_s16 }
  0x24   : > { %p77_p4 = scmp.eq.s32.totalorder %s1340_s20, 0  ;;  %s66_s8 = ssub.s32 %s1336_s19, %s2651_s30 }
  0x25   : > { %p1138_p9 = scmp.lt.s32.totalorder %s1340_s20, 2  ;;  %p67_p10 = scmp.eq.s32.totalorder %s66_s8, 0 }
  0x26   : > { %p78_p13 = por %p77_p4, %p76_p6  ;;  %p1455_p0 = por %p1407_p2, %p76_p6 }
  0x27   : > { %s148_s10 = sand.u32 1, %s1328_s17   ;;  %s1111_s13 = sshll.u32 %s1336_s19, 7 }
  0x28   : > { %s1461_s11 = scalar_select %p67_p10, %s1328_s17, %s69_s4  }
  0x29   : > { %s1096_s12 = sshll.u32 %s148_s10, 3  ;;  %s158_s21 = scalar_lea.hbm %s2623_s2, %s1111_s13 }
  0x2a   : > { %s152_s27 = scalar_lea.vmem [#allocation7], %s1096_s12  ;;  %p1467_p11 = pnand %p1138_p9, %p78_p13 }
  0x2b   : > { %s160_s28 = sshll.u32 %s152_s27, 4  ;;  %s149_s23 = scalar_lea.sflag [#allocation8], %s148_s10  ;;  %s161_s28 = int_to_ptr.vmem [resolvable:$true] %s160_s28 }
  0x2c   : > { %p1228_p2 = pneg %p1467_p11  ;;  %s1239_s5 = scalar_lea.vmem %s161_s28, 128 }
  0x2d   : > { %p1240_p12 = scmp.ne.s32.totalorder %s161_s28, %s1239_s5  ;;  %s1344_s4 = smov [#allocation7]  }
  0x2e   : > { %s1244_s6 = sshll.u32 %s1344_s4, 4  ;;  %s1245_s6 = int_to_ptr.vmem [resolvable:$false] %s1244_s6 }
  0x2f   : > { %p1242_p3 = pnand %p1240_p12, %p1228_p2  ;;  %s1246_s7 = scalar_lea.vmem %s1245_s6, 256 }
  0x30   : > { %p1247_p7 = scmp.lt.s32.totalorder %s161_s28, %s1245_s6  ;;  %p1248_p6 = scmp.lt.s32.totalorder %s1246_s7, %s1239_s5 }
  0x31   : > { %p1243_p5 = pneg %p1242_p3 }
  0x32   : > { %p1249_p4 = por %p1248_p6, %p1247_p7 }
  0x34   : > { %p1250_p10 = pnand %p1249_p4, %p1243_p5 }
  0x36   : > { %1253 = shalt.err (!%p1250_p10)
}
  0x37   : > { %1132 = dma.hbm_to_vmem [thread:$0]  (!%p1467_p11), %s158_s21, 128, %s161_s28, %s149_s23  }
  0x38   : > { %169 = sbr.rel (%p1423_p8) target bundleno = 450 (0x1c2), region = 28 }
  0x3d   : > { %1307 = dma.done.wait (%p1403_p1), [#allocation5], 64  }
  0x3e   : > { %1309 = vsyncadd (%p1403_p1), [#allocation5], 4294967232  ;;  %s1482_s8 = sand.u32 1, %s1324_s16   ;;  %p2634_p9 = scmp.ne.s32.totalorder %s2628_s24, 0 }
  0x3f   : > { %s1101_s10 = sshll.u32 %s1482_s8, 3  ;;  %s176_s12 = scalar_lea.sflag [#allocation8], %s1482_s8 }
  0x40   : > { %s1488_s13 = scalar_lea.vmem [#allocation7], %s1101_s10 }
  0x41   : > { %1311 = dma.done.wait (%p2634_p9), %s176_s12, 128  }
  0x42   : > { %1313 = vsyncadd (%p2634_p9), %s176_s12, 4294967168  ;;  %s1495_s22 = sshll.u32 %s1332_s18, 7  ;;  %v214_v0 = vld [vmem:[#allocation4] ss:$2 sm:$0x3]  ;;  %v278_v14 = vlaneseq  ;;  %s199_s18 = scalar_lea.vmem [#allocation9], %s1101_s10 }
  0x43   : > { %s203_s26 = sld [smem:[#allocation3 + %s1495_s22]]  ;;  %s204_s14 = sadd.s32 1, %s1495_s22  ;;  %v216_v2 = vld [vmem:[#allocation4 + $0x1] ss:$2 sm:$0x3] }
  0x44   : > { %s205_s0 = sld [smem:[#allocation3 + %s204_s14]]  ;;  %s206_s21 = sadd.s32 2, %s1495_s22  ;;  %v1503_v19 = vshrl.u32 %v278_v14, 7 }
  0x45   : > { %s207_s27 = sld [smem:[#allocation3 + %s206_s21]]  ;;  %s208_s28 = sadd.s32 3, %s1495_s22 }
  0x46   : > { %s209_s29 = sld [smem:[#allocation3 + %s208_s28]]  ;;  %s210_s23 = sadd.s32 4, %s1495_s22  ;;  %v1506_v24 = vsub.s32 0, %v1503_v19  ;;  %v1509_v25 = vsub.s32 1, %v1503_v19  ;;  %v1512_v26 = vadd.s32 120, %v1503_v19  ;;  %v1515_v28 = vadd.s32 112, %v1503_v19 }
  0x47   : > { %s211_s5 = sld [smem:[#allocation3 + %s210_s23]]  ;;  %s212_s24 = sadd.s32 5, %s1495_s22  ;;  %v1518_v29 = vadd.s32 104, %v1503_v19  ;;  %v1521_v30 = vadd.s32 96, %v1503_v19  ;;  %v1524_v32 = vadd.s32 88, %v1503_v19  ;;  %v1527_v33 = vadd.s32 80, %v1503_v19 }
  0x48   : > { %s213_s4 = sld [smem:[#allocation3 + %s212_s24]]  ;;  %v1530_v34 = vadd.s32 72, %v1503_v19  ;;  %v1533_v36 = vadd.s32 64, %v1503_v19  ;;  %v1536_v37 = vadd.s32 56, %v1503_v19  ;;  %v1539_v38 = vadd.s32 48, %v1503_v19  ;;  %s996_s6 = sshll.u32 %s199_s18, 4  ;;  %s997_s6 = int_to_ptr.vmem [resolvable:$true] %s996_s6 }
  0x49   : > { %v217_v1 = vstv %s203_s26  ;;  %v1542_v40 = vadd.s32 40, %v1503_v19  ;;  %v1545_v41 = vadd.s32 32, %v1503_v19  ;;  %v1548_v42 = vadd.s32 24, %v1503_v19  ;;  %s980_s26 = scalar_lea.sflag [#allocation6], %s1482_s8  ;;  %s1254_s14 = scalar_lea.vmem %s997_s6, 128 }
  0x4a   : > { %v218_v3 = vmul.f32 %v217_v1, %v214_v0  ;;  %v219_v4 = vstv %s205_s0  ;;  %v1551_v45 = vadd.s32 16, %v1503_v19  ;;  %v1554_v46 = vadd.s32 8, %v1503_v19  ;;  %p1255_p1 = scmp.ne.s32.totalorder %s997_s6, %s1254_s14  ;;  %s1345_s0 = smov [#allocation9]  }
  0x4b   : > { %v220_v5 = vmul.f32 %v219_v4, %v216_v2  ;;  %v222_v6 = vstv %s207_s27  ;;  %v1557_v48 = vadd.s32 248, %v1503_v19  ;;  %v1560_v49 = vadd.s32 240, %v1503_v19  ;;  %s1258_s21 = sshll.u32 %s1345_s0, 4  ;;  %s1259_s21 = int_to_ptr.vmem [resolvable:$false] %s1258_s21 }
  0x4c   : > { %v224_v7 = vstv %s209_s29  ;;  %v1563_v50 = vadd.s32 232, %v1503_v19  ;;  %v1566_v53 = vadd.s32 224, %v1503_v19  ;;  %v1569_v54 = vadd.s32 216, %v1503_v19  ;;  %p1256_p8 = pnand %p1255_p1, %p1455_p0  ;;  %s1260_s27 = scalar_lea.vmem %s1259_s21, 256 }
  0x4d   : > { %v221_v8 = vadd.f32 %v220_v5, %v218_v3  ;;  %v225_v9 = vmul.f32 %v224_v7, %v214_v0  ;;  %v226_v10 = vstv %s211_s5  ;;  %v1572_v56 = vadd.s32 208, %v1503_v19  ;;  %p1261_p11 = scmp.lt.s32.totalorder %s997_s6, %s1259_s21  ;;  %p1262_p2 = scmp.lt.s32.totalorder %s1260_s27, %s1254_s14 }
  0x4e   : > { %v227_v11 = vmul.f32 %v226_v10, %v216_v2  ;;  %v229_v13 = vstv %s213_s4  ;;  %v1575_v60 = vadd.s32 200, %v1503_v19  ;;  %v1582_v62 = vadd.s32 192, %v1503_v19  ;;  %p1257_p13 = pneg %p1256_p8 }
  0x4f   : > { %v223_v12 = vadd.f32 %v222_v6, %v221_v8  ;;  %v1585_v63 = vadd.s32 184, %v1503_v19  ;;  %v1596_v6 = vadd.s32 176, %v1503_v19  ;;  %v1599_v7 = vadd.s32 168, %v1503_v19  ;;  %p1263_p12 = por %p1262_p2, %p1261_p11 }
  0x50   : > { %v228_v15 = vadd.f32 %v227_v11, %v225_v9  ;;  %v1606_v9 = vadd.s32 160, %v1503_v19  ;;  %v1613_v14 = vadd.s32 152, %v1503_v19 }
  0x51   : > { %v231_v16 = vadd.f32 1.0, %v223_v12  ;;  %p1264_p3 = pnand %p1263_p12, %p1257_p13 }
  0x52   : > { %v230_v17 = vadd.f32 %v229_v13, %v228_v15 }
  0x53   : > { %v232_v18 = vmul.f32 16.0, %v231_v16  ;;  %v1623_v16 = vadd.s32 144, %v1503_v19 }
  0x54   : > { %v235_v20 = vadd.f32 1.0, %v230_v17  ;;  %v1626_v17 = vadd.s32 136, %v1503_v19 }
  0x55   : > { %v1104_v21 = vadd.f32 -1.0, %v232_v18  ;;  %v1629_v18 = vadd.s32 128, %v1503_v19 }
  0x56   : > { %v236_v22 = vmul.f32 16.0, %v235_v20 }
  0x57   : > { %v234_v23 = vmul.f32 0.5, %v1104_v21 }
  0x58   : > { %v1105_v27 = vadd.f32 -1.0, %v236_v22 }
  0x59   : > { %v239_v31 = vfloor.f32 %v234_v23 }
  0x5a   : > { %v238_v35 = vmul.f32 0.5, %v1105_v27 }
  0x5b   : > { %v1113_v39 = vtrunc.f32 %v239_v31  ;;  %v241_v44 = vsub.f32 %v234_v23, %v239_v31 }
  0x5c   : > { %v240_v43 = vfloor.f32 %v238_v35 }
  0x5d   : > { %v1114_v47 = vcvt.f32.s32 %v1113_v39  ;;  %v242_v57 = vsub.f32 1.0, %v241_v44 }
  0x5e   : > { %v243_v51 = vsub.f32 %v238_v35, %v240_v43  ;;  %v1115_v52 = vtrunc.f32 %v240_v43 }
  0x5f   : > { %v246_v55 = vadd.s32 1, %v1114_v47  ;;  %vm249_vm0 = vcmp.ge.s32.totalorder %v1114_v47, 0  ;;  %vm250_vm1 = vcmp.lt.s32.totalorder %v1114_v47, 16 }
  0x60   : > { %v244_v58 = vsub.f32 1.0, %v243_v51  ;;  %v1116_v59 = vcvt.f32.s32 %v1115_v52  ;;  %vm1577_vm2 = vmand %vm249_vm0, %vm250_vm1  ;;  %v268_v8 = vmul.f32 %v243_v51, %v242_v57  ;;  %v271_v12 = vmul.f32 %v243_v51, %v241_v44 }
  0x61   : > { %vm252_vm3 = vcmp.ge.s32.totalorder %v246_v55, 0  ;;  %vm253_vm4 = vcmp.lt.s32.totalorder %v246_v55, 16 }
  0x62   : > { %v248_v0 = vadd.s32 1, %v1116_v59  ;;  %vm1587_vm5 = vmand %vm252_vm3, %vm253_vm4  ;;  %vm255_vm6 = vcmp.ge.s32.totalorder %v1116_v59, 0  ;;  %vm256_vm7 = vcmp.lt.s32.totalorder %v1116_v59, 16  ;;  %v262_v2 = vmul.f32 %v244_v58, %v242_v57 }
  0x63   : > { %vm1591_vm8 = vmand %vm255_vm6, %vm256_vm7  ;;  %v265_v4 = vmul.f32 %v244_v58, %v241_v44  ;;  %v273_v5 = vmul.u32 16, %v1116_v59 }
  0x64   : > { %vm258_vm9 = vcmp.ge.s32.totalorder %v248_v0, 0  ;;  %vm259_vm10 = vcmp.lt.s32.totalorder %v248_v0, 16  ;;  %vm261_vm11 = vmand %vm1591_vm8, %vm1577_vm2 }
  0x65   : > { %vm1608_vm12 = vmand %vm258_vm9, %vm259_vm10  ;;  %v263_v11 = vsel %vm261_vm11, %v262_v2, 0.0  ;;  %v274_v13 = vadd.s32 %v1114_v47, %v273_v5 }
  0x66   : > { %vm264_vm13 = vmand %vm1591_vm8, %vm1587_vm5  ;;  %v1620_v15 = vrot.slane %v263_v11, %v1506_v24  ;;  %v1636_v23 = vrot.slane %v263_v11, %v1509_v25 }
  0x67   : > { %v266_v20 = vsel %vm264_vm13, %v265_v4, 0.0  ;;  %vm267_vm14 = vmand %vm1608_vm12, %vm1577_vm2  ;;  %v275_v21 = vadd.s32 1, %v274_v13  ;;  %v276_v22 = vadd.s32 16, %v274_v13  ;;  %v1643_v31 = vrot.slane %v274_v13, %v1506_v24 }
  0x68   : > { %v269_v27 = vsel %vm267_vm14, %v268_v8, 0.0  ;;  %vm270_vm15 = vmand %vm1608_vm12, %vm1587_vm5  ;;  %v1646_v35 = vrot.slane %v274_v13, %v1509_v25  ;;  %v1649_v39 = vrot.slane %v266_v20, %v1506_v24  ;;  %v1682_v2 = vrot.slane %v266_v20, %v1509_v25 }
  0x69   : > { %v272_v43 = vsel %vm270_vm15, %v271_v12, 0.0  ;;  %v277_v44 = vadd.s32 1, %v276_v22  ;;  %v1652_v47 = vrot.slane %v275_v21, %v1506_v24  ;;  %v1655_v51 = vrot.slane %v275_v21, %v1509_v25 }
  0x6a   : > { %v1658_v52 = vrot.slane %v276_v22, %v1506_v24  ;;  %v1661_v55 = vrot.slane %v276_v22, %v1509_v25  ;;  %v1664_v57 = vrot.slane %v272_v43, %v1506_v24  ;;  %v1667_v58 = vrot.slane %v272_v43, %v1509_v25 }
  0x6b   : > { %v1670_v59 = vrot.slane %v277_v44, %v1506_v24  ;;  %v1673_v61 = vrot.slane %v277_v44, %v1509_v25  ;;  %v1676_v0 = vrot.slane %v269_v27, %v1506_v24  ;;  %v1679_v1 = vrot.slane %v269_v27, %v1509_v25 }
  0x6c   : > { %vm350_vm0 = vcmp.eq.s32.totalorder %v1512_v26, %v1646_v35  ;;  %vm422_vm1 = vcmp.eq.s32.totalorder %v1512_v26, %v1655_v51  ;;  %vm494_vm2 = vcmp.eq.s32.totalorder %v1512_v26, %v1661_v55  ;;  %vm421_vm4 = vcmp.eq.s32.totalorder %v1512_v26, %v1652_v47 }
  0x6d   : > { %vm566_vm3 = vcmp.eq.s32.totalorder %v1512_v26, %v1673_v61  ;;  %vm493_vm5 = vcmp.eq.s32.totalorder %v1512_v26, %v1658_v52  ;;  %vm565_vm6 = vcmp.eq.s32.totalorder %v1512_v26, %v1670_v59  ;;  %vm349_vm7 = vcmp.eq.s32.totalorder %v1512_v26, %v1643_v31 }
  0x6e   : > { %v641_v24 = vsel %vm566_vm3, %v1667_v58, 0.0  ;;  %v640_v25 = vsel %vm565_vm6, %v1664_v57, 0.0  ;;  %vm420_vm8 = vcmp.eq.s32.totalorder %v1515_v28, %v1655_v51  ;;  %vm492_vm9 = vcmp.eq.s32.totalorder %v1515_v28, %v1661_v55 }
  0x6f   : > { %v716_v3 = vsel %vm494_vm2, %v1679_v1, %v641_v24  ;;  %v715_v4 = vsel %vm493_vm5, %v1676_v0, %v640_v25  ;;  %vm564_vm10 = vcmp.eq.s32.totalorder %v1515_v28, %v1673_v61  ;;  %vm348_vm11 = vcmp.eq.s32.totalorder %v1515_v28, %v1646_v35 }
  0x70   : > { %v791_v5 = vsel %vm422_vm1, %v1682_v2, %v716_v3  ;;  %v790_v8 = vsel %vm421_vm4, %v1649_v39, %v715_v4  ;;  %v639_v10 = vsel %vm564_vm10, %v1667_v58, 0.0  ;;  %vm347_vm12 = vcmp.eq.s32.totalorder %v1515_v28, %v1643_v31 }
  0x71   : > { %v866_v11 = vsel %vm350_vm0, %v1636_v23, %v791_v5  ;;  %v865_v12 = vsel %vm349_vm7, %v1620_v15, %v790_v8  ;;  %v714_v13 = vsel %vm492_vm9, %v1679_v1, %v639_v10  ;;  %vm419_vm13 = vcmp.eq.s32.totalorder %v1515_v28, %v1652_v47 }
  0x72   : > { %903 = vmatprep.subr.mxu0 %v866_v11  ;;  %v789_v20 = vsel %vm420_vm8, %v1682_v2, %v714_v13  ;;  %vm491_vm14 = vcmp.eq.s32.totalorder %v1515_v28, %v1658_v52  ;;  %vm563_vm15 = vcmp.eq.s32.totalorder %v1515_v28, %v1670_v59  ;;  %vm346_vm0 = vcmp.eq.s32.totalorder %v1518_v29, %v1646_v35 }
  0x73   : > { %904 = vmatpush1.msra.mxu0 %v865_v12  ;;  %v864_v26 = vsel %vm348_vm11, %v1636_v23, %v789_v20  ;;  %v638_v21 = vsel %vm563_vm15, %v1664_v57, 0.0  ;;  %vm490_vm1 = vcmp.eq.s32.totalorder %v1518_v29, %v1661_v55  ;;  %vm418_vm2 = vcmp.eq.s32.totalorder %v1518_v29, %v1655_v51 }
  0x74   : > { %905 = vmatprep.subr.mxu0 %v864_v26  ;;  %v713_v22 = vsel %vm491_vm14, %v1676_v0, %v638_v21  ;;  %vm562_vm3 = vcmp.eq.s32.totalorder %v1518_v29, %v1673_v61  ;;  %vm417_vm4 = vcmp.eq.s32.totalorder %v1518_v29, %v1652_v47  ;;  %vm489_vm5 = vcmp.eq.s32.totalorder %v1518_v29, %v1658_v52 }
  0x75   : > { %v788_v27 = vsel %vm419_vm13, %v1649_v39, %v713_v22  ;;  %v637_v43 = vsel %vm562_vm3, %v1667_v58, 0.0  ;;  %vm561_vm6 = vcmp.eq.s32.totalorder %v1518_v29, %v1670_v59  ;;  %vm345_vm7 = vcmp.eq.s32.totalorder %v1518_v29, %v1643_v31 }
  0x76   : > { %v863_v44 = vsel %vm347_vm12, %v1620_v15, %v788_v27  ;;  %v712_v24 = vsel %vm490_vm1, %v1679_v1, %v637_v43  ;;  %v636_v25 = vsel %vm561_vm6, %v1664_v57, 0.0  ;;  %vm344_vm8 = vcmp.eq.s32.totalorder %v1521_v30, %v1646_v35 }
  0x77   : > { %906 = vmatpush1.msra.mxu0 %v863_v44  ;;  %v787_v3 = vsel %vm418_vm2, %v1682_v2, %v712_v24  ;;  %v711_v4 = vsel %vm489_vm5, %v1676_v0, %v636_v25  ;;  %vm488_vm9 = vcmp.eq.s32.totalorder %v1521_v30, %v1661_v55  ;;  %vm416_vm10 = vcmp.eq.s32.totalorder %v1521_v30, %v1655_v51 }
  0x78   : > { %v862_v28 = vsel %vm346_vm0, %v1636_v23, %v787_v3  ;;  %v786_v5 = vsel %vm417_vm4, %v1649_v39, %v711_v4  ;;  %vm560_vm11 = vcmp.eq.s32.totalorder %v1521_v30, %v1673_v61  ;;  %vm343_vm12 = vcmp.eq.s32.totalorder %v1521_v30, %v1643_v31 }
  0x79   : > { %907 = vmatprep.subr.mxu0 %v862_v28  ;;  %v861_v8 = vsel %vm345_vm7, %v1620_v15, %v786_v5  ;;  %v635_v10 = vsel %vm560_vm11, %v1667_v58, 0.0  ;;  %vm487_vm13 = vcmp.eq.s32.totalorder %v1521_v30, %v1658_v52  ;;  %vm415_vm14 = vcmp.eq.s32.totalorder %v1521_v30, %v1652_v47 }
  0x7a   : > { %908 = vmatpush1.msra.mxu0 %v861_v8  ;;  %v710_v29 = vsel %vm488_vm9, %v1679_v1, %v635_v10  ;;  %vm559_vm15 = vcmp.eq.s32.totalorder %v1521_v30, %v1670_v59  ;;  %vm414_vm0 = vcmp.eq.s32.totalorder %v1524_v32, %v1655_v51  ;;  %vm486_vm1 = vcmp.eq.s32.totalorder %v1524_v32, %v1661_v55 }
  0x7b   : > { %v785_v11 = vsel %vm416_vm10, %v1682_v2, %v710_v29  ;;  %v634_v12 = vsel %vm559_vm15, %v1664_v57, 0.0  ;;  %vm558_vm2 = vcmp.eq.s32.totalorder %v1524_v32, %v1673_v61  ;;  %vm342_vm3 = vcmp.eq.s32.totalorder %v1524_v32, %v1646_v35 }
  0x7c   : > { %v860_v13 = vsel %vm344_vm8, %v1636_v23, %v785_v11  ;;  %v709_v20 = vsel %vm487_vm13, %v1676_v0, %v634_v12  ;;  %v633_v26 = vsel %vm558_vm2, %v1667_v58, 0.0  ;;  %vm341_vm4 = vcmp.eq.s32.totalorder %v1524_v32, %v1643_v31 }
  0x7d   : > { %909 = vmatprep.subr.mxu0 %v860_v13  ;;  %v784_v21 = vsel %vm415_vm14, %v1649_v39, %v709_v20  ;;  %v708_v22 = vsel %vm486_vm1, %v1679_v1, %v633_v26  ;;  %vm485_vm5 = vcmp.eq.s32.totalorder %v1524_v32, %v1658_v52  ;;  %vm413_vm6 = vcmp.eq.s32.totalorder %v1524_v32, %v1652_v47 }
  0x7e   : > { %v859_v27 = vsel %vm343_vm12, %v1620_v15, %v784_v21  ;;  %v783_v43 = vsel %vm414_vm0, %v1682_v2, %v708_v22  ;;  %vm557_vm7 = vcmp.eq.s32.totalorder %v1524_v32, %v1670_v59  ;;  %vm340_vm8 = vcmp.eq.s32.totalorder %v1527_v33, %v1646_v35 }
  0x7f   : > { %910 = vmatpush1.msra.mxu0 %v859_v27  ;;  %v858_v44 = vsel %vm342_vm3, %v1636_v23, %v783_v43  ;;  %v632_v24 = vsel %vm557_vm7, %v1664_v57, 0.0  ;;  %vm484_vm9 = vcmp.eq.s32.totalorder %v1527_v33, %v1661_v55  ;;  %vm412_vm10 = vcmp.eq.s32.totalorder %v1527_v33, %v1655_v51 }
  0x80   : > { %911 = vmatprep.subr.mxu0 %v858_v44  ;;  %v707_v30 = vsel %vm485_vm5, %v1676_v0, %v632_v24  ;;  %vm556_vm11 = vcmp.eq.s32.totalorder %v1527_v33, %v1673_v61  ;;  %vm411_vm12 = vcmp.eq.s32.totalorder %v1527_v33, %v1652_v47  ;;  %vm483_vm13 = vcmp.eq.s32.totalorder %v1527_v33, %v1658_v52 }
  0x81   : > { %v782_v25 = vsel %vm413_vm6, %v1649_v39, %v707_v30  ;;  %v631_v3 = vsel %vm556_vm11, %v1667_v58, 0.0  ;;  %vm555_vm14 = vcmp.eq.s32.totalorder %v1527_v33, %v1670_v59  ;;  %vm339_vm15 = vcmp.eq.s32.totalorder %v1527_v33, %v1643_v31 }
  0x82   : > { %v857_v4 = vsel %vm341_vm4, %v1620_v15, %v782_v25  ;;  %v706_v28 = vsel %vm484_vm9, %v1679_v1, %v631_v3  ;;  %v630_v5 = vsel %vm555_vm14, %v1664_v57, 0.0  ;;  %vm338_vm0 = vcmp.eq.s32.totalorder %v1530_v34, %v1646_v35 }
  0x83   : > { %912 = vmatpush1.msra.mxu0 %v857_v4  ;;  %v781_v8 = vsel %vm412_vm10, %v1682_v2, %v706_v28  ;;  %v705_v10 = vsel %vm483_vm13, %v1676_v0, %v630_v5  ;;  %vm482_vm1 = vcmp.eq.s32.totalorder %v1530_v34, %v1661_v55  ;;  %vm410_vm2 = vcmp.eq.s32.totalorder %v1530_v34, %v1655_v51 }
  0x84   : > { %v856_v32 = vsel %vm340_vm8, %v1636_v23, %v781_v8  ;;  %v780_v29 = vsel %vm411_vm12, %v1649_v39, %v705_v10  ;;  %vm554_vm3 = vcmp.eq.s32.totalorder %v1530_v34, %v1673_v61  ;;  %vm337_vm4 = vcmp.eq.s32.totalorder %v1530_v34, %v1643_v31 }
  0x85   : > { %913 = vmatprep.subr.mxu0 %v856_v32  ;;  %v855_v11 = vsel %vm339_vm15, %v1620_v15, %v780_v29  ;;  %v629_v12 = vsel %vm554_vm3, %v1667_v58, 0.0  ;;  %vm481_vm5 = vcmp.eq.s32.totalorder %v1530_v34, %v1658_v52  ;;  %vm409_vm6 = vcmp.eq.s32.totalorder %v1530_v34, %v1652_v47 }
  0x86   : > { %914 = vmatpush1.msra.mxu0 %v855_v11  ;;  %v704_v33 = vsel %vm482_vm1, %v1679_v1, %v629_v12  ;;  %vm553_vm7 = vcmp.eq.s32.totalorder %v1530_v34, %v1670_v59  ;;  %vm408_vm8 = vcmp.eq.s32.totalorder %v1533_v36, %v1655_v51  ;;  %vm480_vm9 = vcmp.eq.s32.totalorder %v1533_v36, %v1661_v55 }
  0x87   : > { %v779_v13 = vsel %vm410_vm2, %v1682_v2, %v704_v33  ;;  %v628_v20 = vsel %vm553_vm7, %v1664_v57, 0.0  ;;  %vm552_vm10 = vcmp.eq.s32.totalorder %v1533_v36, %v1673_v61  ;;  %vm336_vm11 = vcmp.eq.s32.totalorder %v1533_v36, %v1646_v35 }
  0x88   : > { %v854_v26 = vsel %vm338_vm0, %v1636_v23, %v779_v13  ;;  %v703_v21 = vsel %vm481_vm5, %v1676_v0, %v628_v20  ;;  %v627_v22 = vsel %vm552_vm10, %v1667_v58, 0.0  ;;  %vm335_vm12 = vcmp.eq.s32.totalorder %v1533_v36, %v1643_v31 }
  0x89   : > { %915 = vmatprep.subr.mxu0 %v854_v26  ;;  %v778_v27 = vsel %vm409_vm6, %v1649_v39, %v703_v21  ;;  %v702_v43 = vsel %vm480_vm9, %v1679_v1, %v627_v22  ;;  %vm479_vm13 = vcmp.eq.s32.totalorder %v1533_v36, %v1658_v52  ;;  %vm407_vm14 = vcmp.eq.s32.totalorder %v1533_v36, %v1652_v47 }
  0x8a   : > { %v853_v44 = vsel %vm337_vm4, %v1620_v15, %v778_v27  ;;  %v777_v24 = vsel %vm408_vm8, %v1682_v2, %v702_v43  ;;  %vm551_vm15 = vcmp.eq.s32.totalorder %v1533_v36, %v1670_v59  ;;  %vm334_vm0 = vcmp.eq.s32.totalorder %v1536_v37, %v1646_v35 }
  0x8b   : > { %916 = vmatpush1.msra.mxu0 %v853_v44  ;;  %v852_v30 = vsel %vm336_vm11, %v1636_v23, %v777_v24  ;;  %v626_v25 = vsel %vm551_vm15, %v1664_v57, 0.0  ;;  %vm478_vm1 = vcmp.eq.s32.totalorder %v1536_v37, %v1661_v55  ;;  %vm406_vm2 = vcmp.eq.s32.totalorder %v1536_v37, %v1655_v51 }
  0x8c   : > { %917 = vmatprep.subr.mxu0 %v852_v30  ;;  %v701_v34 = vsel %vm479_vm13, %v1676_v0, %v626_v25  ;;  %vm550_vm3 = vcmp.eq.s32.totalorder %v1536_v37, %v1673_v61  ;;  %vm405_vm4 = vcmp.eq.s32.totalorder %v1536_v37, %v1652_v47  ;;  %vm477_vm5 = vcmp.eq.s32.totalorder %v1536_v37, %v1658_v52 }
  0x8d   : > { %v776_v3 = vsel %vm407_vm14, %v1649_v39, %v701_v34  ;;  %v625_v4 = vsel %vm550_vm3, %v1667_v58, 0.0  ;;  %vm549_vm6 = vcmp.eq.s32.totalorder %v1536_v37, %v1670_v59  ;;  %vm333_vm7 = vcmp.eq.s32.totalorder %v1536_v37, %v1643_v31 }
  0x8e   : > { %v851_v28 = vsel %vm335_vm12, %v1620_v15, %v776_v3  ;;  %v700_v5 = vsel %vm478_vm1, %v1679_v1, %v625_v4  ;;  %v624_v8 = vsel %vm549_vm6, %v1664_v57, 0.0  ;;  %vm332_vm8 = vcmp.eq.s32.totalorder %v1539_v38, %v1646_v35 }
  0x8f   : > { %918 = vmatpush1.msra.mxu0 %v851_v28  ;;  %v775_v10 = vsel %vm406_vm2, %v1682_v2, %v700_v5  ;;  %v699_v32 = vsel %vm477_vm5, %v1676_v0, %v624_v8  ;;  %vm476_vm9 = vcmp.eq.s32.totalorder %v1539_v38, %v1661_v55  ;;  %vm404_vm10 = vcmp.eq.s32.totalorder %v1539_v38, %v1655_v51 }
  0x90   : > { %v850_v36 = vsel %vm334_vm0, %v1636_v23, %v775_v10  ;;  %v774_v29 = vsel %vm405_vm4, %v1649_v39, %v699_v32  ;;  %vm548_vm11 = vcmp.eq.s32.totalorder %v1539_v38, %v1673_v61  ;;  %vm331_vm12 = vcmp.eq.s32.totalorder %v1539_v38, %v1643_v31 }
  0x91   : > { %919 = vmatprep.subr.mxu0 %v850_v36  ;;  %v849_v11 = vsel %vm333_vm7, %v1620_v15, %v774_v29  ;;  %v623_v12 = vsel %vm548_vm11, %v1667_v58, 0.0  ;;  %vm475_vm13 = vcmp.eq.s32.totalorder %v1539_v38, %v1658_v52  ;;  %vm403_vm14 = vcmp.eq.s32.totalorder %v1539_v38, %v1652_v47 }
  0x92   : > { %920 = vmatpush1.msra.mxu0 %v849_v11  ;;  %v698_v37 = vsel %vm476_vm9, %v1679_v1, %v623_v12  ;;  %vm547_vm15 = vcmp.eq.s32.totalorder %v1539_v38, %v1670_v59  ;;  %vm402_vm0 = vcmp.eq.s32.totalorder %v1542_v40, %v1655_v51  ;;  %vm474_vm1 = vcmp.eq.s32.totalorder %v1542_v40, %v1661_v55 }
  0x93   : > { %v773_v33 = vsel %vm404_vm10, %v1682_v2, %v698_v37  ;;  %v622_v13 = vsel %vm547_vm15, %v1664_v57, 0.0  ;;  %vm546_vm2 = vcmp.eq.s32.totalorder %v1542_v40, %v1673_v61  ;;  %vm330_vm3 = vcmp.eq.s32.totalorder %v1542_v40, %v1646_v35 }
  0x94   : > { %v848_v20 = vsel %vm332_vm8, %v1636_v23, %v773_v33  ;;  %v697_v26 = vsel %vm475_vm13, %v1676_v0, %v622_v13  ;;  %v621_v21 = vsel %vm546_vm2, %v1667_v58, 0.0  ;;  %vm329_vm4 = vcmp.eq.s32.totalorder %v1542_v40, %v1643_v31 }
  0x95   : > { %921 = vmatprep.subr.mxu0 %v848_v20  ;;  %v772_v22 = vsel %vm403_vm14, %v1649_v39, %v697_v26  ;;  %v696_v27 = vsel %vm474_vm1, %v1679_v1, %v621_v21  ;;  %vm473_vm5 = vcmp.eq.s32.totalorder %v1542_v40, %v1658_v52  ;;  %vm401_vm6 = vcmp.eq.s32.totalorder %v1542_v40, %v1652_v47 }
  0x96   : > { %v847_v43 = vsel %vm331_vm12, %v1620_v15, %v772_v22  ;;  %v771_v44 = vsel %vm402_vm0, %v1682_v2, %v696_v27  ;;  %vm545_vm7 = vcmp.eq.s32.totalorder %v1542_v40, %v1670_v59  ;;  %vm328_vm8 = vcmp.eq.s32.totalorder %v1545_v41, %v1646_v35 }
  0x97   : > { %922 = vmatpush1.msra.mxu0 %v847_v43  ;;  %v846_v24 = vsel %vm330_vm3, %v1636_v23, %v771_v44  ;;  %v620_v30 = vsel %vm545_vm7, %v1664_v57, 0.0  ;;  %vm472_vm9 = vcmp.eq.s32.totalorder %v1545_v41, %v1661_v55  ;;  %vm400_vm10 = vcmp.eq.s32.totalorder %v1545_v41, %v1655_v51 }
  0x98   : > { %923 = vmatprep.subr.mxu0 %v846_v24  ;;  %v695_v38 = vsel %vm473_vm5, %v1676_v0, %v620_v30  ;;  %vm544_vm11 = vcmp.eq.s32.totalorder %v1545_v41, %v1673_v61  ;;  %vm399_vm12 = vcmp.eq.s32.totalorder %v1545_v41, %v1652_v47  ;;  %vm471_vm13 = vcmp.eq.s32.totalorder %v1545_v41, %v1658_v52 }
  0x99   : > { %v770_v25 = vsel %vm401_vm6, %v1649_v39, %v695_v38  ;;  %v619_v34 = vsel %vm544_vm11, %v1667_v58, 0.0  ;;  %vm543_vm14 = vcmp.eq.s32.totalorder %v1545_v41, %v1670_v59  ;;  %vm327_vm15 = vcmp.eq.s32.totalorder %v1545_v41, %v1643_v31 }
  0x9a   : > { %v845_v3 = vsel %vm329_vm4, %v1620_v15, %v770_v25  ;;  %v694_v4 = vsel %vm472_vm9, %v1679_v1, %v619_v34  ;;  %v618_v28 = vsel %vm543_vm14, %v1664_v57, 0.0  ;;  %vm326_vm0 = vcmp.eq.s32.totalorder %v1548_v42, %v1646_v35 }
  0x9b   : > { %924 = vmatpush1.msra.mxu0 %v845_v3  ;;  %v769_v5 = vsel %vm400_vm10, %v1682_v2, %v694_v4  ;;  %v693_v8 = vsel %vm471_vm13, %v1676_v0, %v618_v28  ;;  %vm470_vm1 = vcmp.eq.s32.totalorder %v1548_v42, %v1661_v55  ;;  %vm398_vm2 = vcmp.eq.s32.totalorder %v1548_v42, %v1655_v51 }
  0x9c   : > { %v844_v40 = vsel %vm328_vm8, %v1636_v23, %v769_v5  ;;  %v768_v10 = vsel %vm399_vm12, %v1649_v39, %v693_v8  ;;  %vm542_vm3 = vcmp.eq.s32.totalorder %v1548_v42, %v1673_v61  ;;  %vm325_vm4 = vcmp.eq.s32.totalorder %v1548_v42, %v1643_v31 }
  0x9d   : > { %925 = vmatprep.subr.mxu0 %v844_v40  ;;  %v843_v32 = vsel %vm327_vm15, %v1620_v15, %v768_v10  ;;  %v617_v36 = vsel %vm542_vm3, %v1667_v58, 0.0  ;;  %vm469_vm5 = vcmp.eq.s32.totalorder %v1548_v42, %v1658_v52  ;;  %vm397_vm6 = vcmp.eq.s32.totalorder %v1548_v42, %v1652_v47 }
  0x9e   : > { %926 = vmatpush1.msra.mxu0 %v843_v32  ;;  %v692_v41 = vsel %vm470_vm1, %v1679_v1, %v617_v36  ;;  %vm541_vm7 = vcmp.eq.s32.totalorder %v1548_v42, %v1670_v59  ;;  %vm396_vm8 = vcmp.eq.s32.totalorder %v1551_v45, %v1655_v51  ;;  %vm468_vm9 = vcmp.eq.s32.totalorder %v1551_v45, %v1661_v55 }
  0x9f   : > { %v767_v29 = vsel %vm398_vm2, %v1682_v2, %v692_v41  ;;  %v616_v11 = vsel %vm541_vm7, %v1664_v57, 0.0  ;;  %vm540_vm10 = vcmp.eq.s32.totalorder %v1551_v45, %v1673_v61  ;;  %vm324_vm11 = vcmp.eq.s32.totalorder %v1551_v45, %v1646_v35 }
  0xa0   : > { %v842_v12 = vsel %vm326_vm0, %v1636_v23, %v767_v29  ;;  %v691_v37 = vsel %vm469_vm5, %v1676_v0, %v616_v11  ;;  %v615_v33 = vsel %vm540_vm10, %v1667_v58, 0.0  ;;  %vm323_vm12 = vcmp.eq.s32.totalorder %v1551_v45, %v1643_v31 }
  0xa1   : > { %927 = vmatprep.subr.mxu0 %v842_v12  ;;  %v766_v13 = vsel %vm397_vm6, %v1649_v39, %v691_v37  ;;  %v690_v20 = vsel %vm468_vm9, %v1679_v1, %v615_v33  ;;  %vm467_vm13 = vcmp.eq.s32.totalorder %v1551_v45, %v1658_v52  ;;  %vm395_vm14 = vcmp.eq.s32.totalorder %v1551_v45, %v1652_v47 }
  0xa2   : > { %v841_v26 = vsel %vm325_vm4, %v1620_v15, %v766_v13  ;;  %v765_v21 = vsel %vm396_vm8, %v1682_v2, %v690_v20  ;;  %vm539_vm15 = vcmp.eq.s32.totalorder %v1551_v45, %v1670_v59  ;;  %vm322_vm0 = vcmp.eq.s32.totalorder %v1554_v46, %v1646_v35 }
  0xa3   : > { %928 = vmatpush1.msra.mxu0 %v841_v26  ;;  %v840_v22 = vsel %vm324_vm11, %v1636_v23, %v765_v21  ;;  %v614_v27 = vsel %vm539_vm15, %v1664_v57, 0.0  ;;  %vm466_vm1 = vcmp.eq.s32.totalorder %v1554_v46, %v1661_v55  ;;  %vm394_vm2 = vcmp.eq.s32.totalorder %v1554_v46, %v1655_v51 }
  0xa4   : > { %929 = vmatprep.subr.mxu0 %v840_v22  ;;  %v689_v42 = vsel %vm467_vm13, %v1676_v0, %v614_v27  ;;  %vm538_vm3 = vcmp.eq.s32.totalorder %v1554_v46, %v1673_v61  ;;  %vm393_vm4 = vcmp.eq.s32.totalorder %v1554_v46, %v1652_v47  ;;  %vm465_vm5 = vcmp.eq.s32.totalorder %v1554_v46, %v1658_v52 }
  0xa5   : > { %v764_v43 = vsel %vm395_vm14, %v1649_v39, %v689_v42  ;;  %v613_v44 = vsel %vm538_vm3, %v1667_v58, 0.0  ;;  %vm537_vm6 = vcmp.eq.s32.totalorder %v1554_v46, %v1670_v59  ;;  %vm321_vm7 = vcmp.eq.s32.totalorder %v1554_v46, %v1643_v31 }
  0xa6   : > { %v839_v24 = vsel %vm323_vm12, %v1620_v15, %v764_v43  ;;  %v688_v30 = vsel %vm466_vm1, %v1679_v1, %v613_v44  ;;  %v612_v38 = vsel %vm537_vm6, %v1664_v57, 0.0  ;;  %vm320_vm8 = vcmp.eq.s32.totalorder %v1503_v19, %v1646_v35 }
  0xa7   : > { %930 = vmatpush1.msra.mxu0 %v839_v24  ;;  %v763_v25 = vsel %vm394_vm2, %v1682_v2, %v688_v30  ;;  %v687_v34 = vsel %vm465_vm5, %v1676_v0, %v612_v38  ;;  %vm464_vm9 = vcmp.eq.s32.totalorder %v1503_v19, %v1661_v55  ;;  %vm392_vm10 = vcmp.eq.s32.totalorder %v1503_v19, %v1655_v51 }
  0xa8   : > { %v838_v45 = vsel %vm322_vm0, %v1636_v23, %v763_v25  ;;  %v762_v3 = vsel %vm393_vm4, %v1649_v39, %v687_v34  ;;  %vm536_vm11 = vcmp.eq.s32.totalorder %v1503_v19, %v1673_v61  ;;  %vm319_vm12 = vcmp.eq.s32.totalorder %v1503_v19, %v1643_v31 }
  0xa9   : > { %931 = vmatprep.subr.mxu0 %v838_v45  ;;  %v837_v4 = vsel %vm321_vm7, %v1620_v15, %v762_v3  ;;  %v611_v28 = vsel %vm536_vm11, %v1667_v58, 0.0  ;;  %vm463_vm13 = vcmp.eq.s32.totalorder %v1503_v19, %v1658_v52  ;;  %vm391_vm14 = vcmp.eq.s32.totalorder %v1503_v19, %v1652_v47 }
  0xaa   : > { %932 = vmatpush1.msra.mxu0 %v837_v4  ;;  %v686_v46 = vsel %vm464_vm9, %v1679_v1, %v611_v28  ;;  %vm535_vm15 = vcmp.eq.s32.totalorder %v1503_v19, %v1670_v59  ;;  %vm454_vm0 = vcmp.eq.s32.totalorder %v1557_v48, %v1655_v51  ;;  %vm526_vm1 = vcmp.eq.s32.totalorder %v1557_v48, %v1661_v55 }
  0xab   : > { %v761_v5 = vsel %vm392_vm10, %v1682_v2, %v686_v46  ;;  %v610_v8 = vsel %vm535_vm15, %v1664_v57, 0.0  ;;  %vm598_vm2 = vcmp.eq.s32.totalorder %v1557_v48, %v1673_v61  ;;  %vm382_vm3 = vcmp.eq.s32.totalorder %v1557_v48, %v1646_v35 }
  0xac   : > { %v836_v40 = vsel %vm320_vm8, %v1636_v23, %v761_v5  ;;  %v685_v10 = vsel %vm463_vm13, %v1676_v0, %v610_v8  ;;  %v673_v32 = vsel %vm598_vm2, %v1667_v58, 0.0  ;;  %vm381_vm4 = vcmp.eq.s32.totalorder %v1557_v48, %v1643_v31 }
  0xad   : > { %933 = vmatprep.subr.mxu0 %v836_v40  ;;  %v760_v36 = vsel %vm391_vm14, %v1649_v39, %v685_v10  ;;  %v748_v41 = vsel %vm526_vm1, %v1679_v1, %v673_v32  ;;  %vm525_vm5 = vcmp.eq.s32.totalorder %v1557_v48, %v1658_v52  ;;  %vm453_vm6 = vcmp.eq.s32.totalorder %v1557_v48, %v1652_v47 }
  0xae   : > { %v835_v29 = vsel %vm319_vm12, %v1620_v15, %v760_v36  ;;  %v823_v11 = vsel %vm454_vm0, %v1682_v2, %v748_v41  ;;  %vm597_vm7 = vcmp.eq.s32.totalorder %v1557_v48, %v1670_v59  ;;  %vm380_vm8 = vcmp.eq.s32.totalorder %v1560_v49, %v1646_v35 }
  0xaf   : > { %934 = vmatpush1.msra.mxu0 %v835_v29  ;;  %v898_v12 = vsel %vm382_vm3, %v1636_v23, %v823_v11  ;;  %v672_v37 = vsel %vm597_vm7, %v1664_v57, 0.0  ;;  %vm524_vm9 = vcmp.eq.s32.totalorder %v1560_v49, %v1661_v55  ;;  %vm452_vm10 = vcmp.eq.s32.totalorder %v1560_v49, %v1655_v51 }
  0xb0   : > { %935 = vmatprep.subr.mxu0 %v898_v12  ;;  %v747_v19 = vsel %vm525_vm5, %v1676_v0, %v672_v37  ;;  %vm596_vm11 = vcmp.eq.s32.totalorder %v1560_v49, %v1673_v61  ;;  %vm451_vm12 = vcmp.eq.s32.totalorder %v1560_v49, %v1652_v47  ;;  %vm523_vm13 = vcmp.eq.s32.totalorder %v1560_v49, %v1658_v52 }
  0xb1   : > { %v822_v33 = vsel %vm453_vm6, %v1649_v39, %v747_v19  ;;  %v671_v13 = vsel %vm596_vm11, %v1667_v58, 0.0  ;;  %vm595_vm14 = vcmp.eq.s32.totalorder %v1560_v49, %v1670_v59  ;;  %vm379_vm15 = vcmp.eq.s32.totalorder %v1560_v49, %v1643_v31 }
  0xb2   : > { %v897_v20 = vsel %vm381_vm4, %v1620_v15, %v822_v33  ;;  %v746_v26 = vsel %vm524_vm9, %v1679_v1, %v671_v13  ;;  %v670_v21 = vsel %vm595_vm14, %v1664_v57, 0.0  ;;  %vm378_vm0 = vcmp.eq.s32.totalorder %v1563_v50, %v1646_v35 }
  0xb3   : > { %936 = vmatpush2.msra.mxu0 %v897_v20  ;;  %v821_v22 = vsel %vm452_vm10, %v1682_v2, %v746_v26  ;;  %v745_v27 = vsel %vm523_vm13, %v1676_v0, %v670_v21  ;;  %vm522_vm1 = vcmp.eq.s32.totalorder %v1563_v50, %v1661_v55  ;;  %vm450_vm2 = vcmp.eq.s32.totalorder %v1563_v50, %v1655_v51 }
  0xb4   : > { %v896_v48 = vsel %vm380_vm8, %v1636_v23, %v821_v22  ;;  %v820_v42 = vsel %vm451_vm12, %v1649_v39, %v745_v27  ;;  %vm594_vm3 = vcmp.eq.s32.totalorder %v1563_v50, %v1673_v61  ;;  %vm377_vm4 = vcmp.eq.s32.totalorder %v1563_v50, %v1643_v31 }
  0xb5   : > { %937 = vmatprep.subr.mxu0 %v896_v48  ;;  %v895_v43 = vsel %vm379_vm15, %v1620_v15, %v820_v42  ;;  %v669_v44 = vsel %vm594_vm3, %v1667_v58, 0.0  ;;  %vm521_vm5 = vcmp.eq.s32.totalorder %v1563_v50, %v1658_v52  ;;  %vm449_vm6 = vcmp.eq.s32.totalorder %v1563_v50, %v1652_v47 }
  0xb6   : > { %938 = vmatpush2.msra.mxu0 %v895_v43  ;;  %v744_v49 = vsel %vm522_vm1, %v1679_v1, %v669_v44  ;;  %vm593_vm7 = vcmp.eq.s32.totalorder %v1563_v50, %v1670_v59  ;;  %vm448_vm8 = vcmp.eq.s32.totalorder %v1566_v53, %v1655_v51  ;;  %vm520_vm9 = vcmp.eq.s32.totalorder %v1566_v53, %v1661_v55 }
  0xb7   : > { %v819_v24 = vsel %vm450_vm2, %v1682_v2, %v744_v49  ;;  %v668_v30 = vsel %vm593_vm7, %v1664_v57, 0.0  ;;  %vm592_vm10 = vcmp.eq.s32.totalorder %v1566_v53, %v1673_v61  ;;  %vm376_vm11 = vcmp.eq.s32.totalorder %v1566_v53, %v1646_v35 }
  0xb8   : > { %v894_v38 = vsel %vm378_vm0, %v1636_v23, %v819_v24  ;;  %v743_v25 = vsel %vm521_vm5, %v1676_v0, %v668_v30  ;;  %v667_v34 = vsel %vm592_vm10, %v1667_v58, 0.0  ;;  %vm375_vm12 = vcmp.eq.s32.totalorder %v1566_v53, %v1643_v31 }
  0xb9   : > { %939 = vmatprep.subr.mxu0 %v894_v38  ;;  %v818_v45 = vsel %vm449_vm6, %v1649_v39, %v743_v25  ;;  %v742_v3 = vsel %vm520_vm9, %v1679_v1, %v667_v34  ;;  %vm519_vm13 = vcmp.eq.s32.totalorder %v1566_v53, %v1658_v52  ;;  %vm447_vm14 = vcmp.eq.s32.totalorder %v1566_v53, %v1652_v47 }
  0xba   : > { %v893_v4 = vsel %vm377_vm4, %v1620_v15, %v818_v45  ;;  %v817_v28 = vsel %vm448_vm8, %v1682_v2, %v742_v3  ;;  %vm591_vm15 = vcmp.eq.s32.totalorder %v1566_v53, %v1670_v59  ;;  %vm374_vm0 = vcmp.eq.s32.totalorder %v1569_v54, %v1646_v35 }
  0xbb   : > { %940 = vmatpush2.msra.mxu0 %v893_v4  ;;  %v892_v46 = vsel %vm376_vm11, %v1636_v23, %v817_v28  ;;  %v666_v5 = vsel %vm591_vm15, %v1664_v57, 0.0  ;;  %vm518_vm1 = vcmp.eq.s32.totalorder %v1569_v54, %v1661_v55  ;;  %vm446_vm2 = vcmp.eq.s32.totalorder %v1569_v54, %v1655_v51 }
  0xbc   : > { %941 = vmatprep.subr.mxu0 %v892_v46  ;;  %v741_v50 = vsel %vm519_vm13, %v1676_v0, %v666_v5  ;;  %vm590_vm3 = vcmp.eq.s32.totalorder %v1569_v54, %v1673_v61  ;;  %vm445_vm4 = vcmp.eq.s32.totalorder %v1569_v54, %v1652_v47  ;;  %vm517_vm5 = vcmp.eq.s32.totalorder %v1569_v54, %v1658_v52 }
  0xbd   : > { %v816_v8 = vsel %vm447_vm14, %v1649_v39, %v741_v50  ;;  %v665_v40 = vsel %vm590_vm3, %v1667_v58, 0.0  ;;  %vm589_vm6 = vcmp.eq.s32.totalorder %v1569_v54, %v1670_v59  ;;  %vm373_vm7 = vcmp.eq.s32.totalorder %v1569_v54, %v1643_v31 }
  0xbe   : > { %v891_v10 = vsel %vm375_vm12, %v1620_v15, %v816_v8  ;;  %v740_v32 = vsel %vm518_vm1, %v1679_v1, %v665_v40  ;;  %v664_v36 = vsel %vm589_vm6, %v1664_v57, 0.0  ;;  %vm372_vm8 = vcmp.eq.s32.totalorder %v1572_v56, %v1646_v35 }
  0xbf   : > { %942 = vmatpush2.msra.mxu0 %v891_v10  ;;  %v815_v41 = vsel %vm446_vm2, %v1682_v2, %v740_v32  ;;  %v739_v29 = vsel %vm517_vm5, %v1676_v0, %v664_v36  ;;  %vm516_vm9 = vcmp.eq.s32.totalorder %v1572_v56, %v1661_v55  ;;  %vm444_vm10 = vcmp.eq.s32.totalorder %v1572_v56, %v1655_v51 }
  0xc0   : > { %v890_v53 = vsel %vm374_vm0, %v1636_v23, %v815_v41  ;;  %v814_v11 = vsel %vm445_vm4, %v1649_v39, %v739_v29  ;;  %vm588_vm11 = vcmp.eq.s32.totalorder %v1572_v56, %v1673_v61  ;;  %vm371_vm12 = vcmp.eq.s32.totalorder %v1572_v56, %v1643_v31 }
  0xc1   : > { %943 = vmatprep.subr.mxu0 %v890_v53  ;;  %v889_v12 = vsel %vm373_vm7, %v1620_v15, %v814_v11  ;;  %v663_v37 = vsel %vm588_vm11, %v1667_v58, 0.0  ;;  %vm515_vm13 = vcmp.eq.s32.totalorder %v1572_v56, %v1658_v52  ;;  %vm443_vm14 = vcmp.eq.s32.totalorder %v1572_v56, %v1652_v47 }
  0xc2   : > { %944 = vmatpush2.msra.mxu0 %v889_v12  ;;  %v738_v54 = vsel %vm516_vm9, %v1679_v1, %v663_v37  ;;  %vm587_vm15 = vcmp.eq.s32.totalorder %v1572_v56, %v1670_v59  ;;  %vm442_vm0 = vcmp.eq.s32.totalorder %v1575_v60, %v1655_v51  ;;  %vm514_vm1 = vcmp.eq.s32.totalorder %v1575_v60, %v1661_v55 }
  0xc3   : > { %v813_v19 = vsel %vm444_vm10, %v1682_v2, %v738_v54  ;;  %v662_v33 = vsel %vm587_vm15, %v1664_v57, 0.0  ;;  %vm586_vm2 = vcmp.eq.s32.totalorder %v1575_v60, %v1673_v61  ;;  %vm370_vm3 = vcmp.eq.s32.totalorder %v1575_v60, %v1646_v35 }
  0xc4   : > { %v888_v13 = vsel %vm372_vm8, %v1636_v23, %v813_v19  ;;  %v737_v20 = vsel %vm515_vm13, %v1676_v0, %v662_v33  ;;  %v661_v26 = vsel %vm586_vm2, %v1667_v58, 0.0  ;;  %vm369_vm4 = vcmp.eq.s32.totalorder %v1575_v60, %v1643_v31 }
  0xc5   : > { %945 = vmatprep.subr.mxu0 %v888_v13  ;;  %v812_v21 = vsel %vm443_vm14, %v1649_v39, %v737_v20  ;;  %v736_v22 = vsel %vm514_vm1, %v1679_v1, %v661_v26  ;;  %vm513_vm5 = vcmp.eq.s32.totalorder %v1575_v60, %v1658_v52  ;;  %vm441_vm6 = vcmp.eq.s32.totalorder %v1575_v60, %v1652_v47 }
  0xc6   : > { %v887_v27 = vsel %vm371_vm12, %v1620_v15, %v812_v21  ;;  %v811_v48 = vsel %vm442_vm0, %v1682_v2, %v736_v22  ;;  %vm585_vm7 = vcmp.eq.s32.totalorder %v1575_v60, %v1670_v59  ;;  %vm368_vm8 = vcmp.eq.s32.totalorder %v1582_v62, %v1646_v35 }
  0xc7   : > { %946 = vmatpush2.msra.mxu0 %v887_v27  ;;  %v886_v42 = vsel %vm370_vm3, %v1636_v23, %v811_v48  ;;  %v660_v43 = vsel %vm585_vm7, %v1664_v57, 0.0  ;;  %vm512_vm9 = vcmp.eq.s32.totalorder %v1582_v62, %v1661_v55  ;;  %vm440_vm10 = vcmp.eq.s32.totalorder %v1582_v62, %v1655_v51 }
  0xc8   : > { %947 = vmatprep.subr.mxu0 %v886_v42  ;;  %v735_v56 = vsel %vm513_vm5, %v1676_v0, %v660_v43  ;;  %vm584_vm11 = vcmp.eq.s32.totalorder %v1582_v62, %v1673_v61  ;;  %vm439_vm12 = vcmp.eq.s32.totalorder %v1582_v62, %v1652_v47  ;;  %vm511_vm13 = vcmp.eq.s32.totalorder %v1582_v62, %v1658_v52 }
  0xc9   : > { %v810_v44 = vsel %vm441_vm6, %v1649_v39, %v735_v56  ;;  %v659_v49 = vsel %vm584_vm11, %v1667_v58, 0.0  ;;  %vm583_vm14 = vcmp.eq.s32.totalorder %v1582_v62, %v1670_v59  ;;  %vm367_vm15 = vcmp.eq.s32.totalorder %v1582_v62, %v1643_v31 }
  0xca   : > { %v885_v24 = vsel %vm369_vm4, %v1620_v15, %v810_v44  ;;  %v734_v30 = vsel %vm512_vm9, %v1679_v1, %v659_v49  ;;  %v658_v38 = vsel %vm583_vm14, %v1664_v57, 0.0  ;;  %vm366_vm0 = vcmp.eq.s32.totalorder %v1585_v63, %v1646_v35 }
  0xcb   : > { %948 = vmatpush2.msra.mxu0 %v885_v24  ;;  %v809_v25 = vsel %vm440_vm10, %v1682_v2, %v734_v30  ;;  %v733_v34 = vsel %vm511_vm13, %v1676_v0, %v658_v38  ;;  %vm510_vm1 = vcmp.eq.s32.totalorder %v1585_v63, %v1661_v55  ;;  %vm438_vm2 = vcmp.eq.s32.totalorder %v1585_v63, %v1655_v51 }
  0xcc   : > { %v884_v60 = vsel %vm368_vm8, %v1636_v23, %v809_v25  ;;  %v808_v45 = vsel %vm439_vm12, %v1649_v39, %v733_v34  ;;  %vm582_vm3 = vcmp.eq.s32.totalorder %v1585_v63, %v1673_v61  ;;  %vm365_vm4 = vcmp.eq.s32.totalorder %v1585_v63, %v1643_v31 }
  0xcd   : > { %949 = vmatprep.subr.mxu0 %v884_v60  ;;  %v883_v3 = vsel %vm367_vm15, %v1620_v15, %v808_v45  ;;  %v657_v4 = vsel %vm582_vm3, %v1667_v58, 0.0  ;;  %vm509_vm5 = vcmp.eq.s32.totalorder %v1585_v63, %v1658_v52  ;;  %vm437_vm6 = vcmp.eq.s32.totalorder %v1585_v63, %v1652_v47 }
  0xce   : > { %950 = vmatpush2.msra.mxu0 %v883_v3  ;;  %v732_v62 = vsel %vm510_vm1, %v1679_v1, %v657_v4  ;;  %vm581_vm7 = vcmp.eq.s32.totalorder %v1585_v63, %v1670_v59  ;;  %vm436_vm8 = vcmp.eq.s32.totalorder %v1596_v6, %v1655_v51  ;;  %vm508_vm9 = vcmp.eq.s32.totalorder %v1596_v6, %v1661_v55 }
  0xcf   : > { %v807_v28 = vsel %vm438_vm2, %v1682_v2, %v732_v62  ;;  %v656_v46 = vsel %vm581_vm7, %v1664_v57, 0.0  ;;  %vm580_vm10 = vcmp.eq.s32.totalorder %v1596_v6, %v1673_v61  ;;  %vm364_vm11 = vcmp.eq.s32.totalorder %v1596_v6, %v1646_v35 }
  0xd0   : > { %v882_v5 = vsel %vm366_vm0, %v1636_v23, %v807_v28  ;;  %v731_v50 = vsel %vm509_vm5, %v1676_v0, %v656_v46  ;;  %v655_v8 = vsel %vm580_vm10, %v1667_v58, 0.0  ;;  %vm363_vm12 = vcmp.eq.s32.totalorder %v1596_v6, %v1643_v31 }
  0xd1   : > { %951 = vmatprep.subr.mxu0 %v882_v5  ;;  %v806_v40 = vsel %vm437_vm6, %v1649_v39, %v731_v50  ;;  %v730_v10 = vsel %vm508_vm9, %v1679_v1, %v655_v8  ;;  %vm507_vm13 = vcmp.eq.s32.totalorder %v1596_v6, %v1658_v52  ;;  %vm435_vm14 = vcmp.eq.s32.totalorder %v1596_v6, %v1652_v47  ;;  %v899_v8 = vld [vmem:[%s1488_s13] sm:$0xff]  ;;  %s994_s13 = scalar_lea.hbm %s2624_s3, %s1495_s22 }
  0xd2   : > { %v881_v32 = vsel %vm365_vm4, %v1620_v15, %v806_v40  ;;  %v805_v36 = vsel %vm436_vm8, %v1682_v2, %v730_v10  ;;  %vm579_vm15 = vcmp.eq.s32.totalorder %v1596_v6, %v1670_v59  ;;  %vm362_vm0 = vcmp.eq.s32.totalorder %v1599_v7, %v1646_v35 }
  0xd3   : > { %952 = vmatpush2.msra.mxu0 %v881_v32  ;;  %v880_v41 = vsel %vm364_vm11, %v1636_v23, %v805_v36  ;;  %v654_v29 = vsel %vm579_vm15, %v1664_v57, 0.0  ;;  %vm506_vm1 = vcmp.eq.s32.totalorder %v1599_v7, %v1661_v55  ;;  %vm434_vm2 = vcmp.eq.s32.totalorder %v1599_v7, %v1655_v51 }
  0xd4   : > { %953 = vmatprep.subr.mxu0 %v880_v41  ;;  %v729_v63 = vsel %vm507_vm13, %v1676_v0, %v654_v29  ;;  %vm578_vm3 = vcmp.eq.s32.totalorder %v1599_v7, %v1673_v61  ;;  %vm433_vm4 = vcmp.eq.s32.totalorder %v1599_v7, %v1652_v47  ;;  %vm505_vm5 = vcmp.eq.s32.totalorder %v1599_v7, %v1658_v52 }
  0xd5   : > { %v804_v53 = vsel %vm435_vm14, %v1649_v39, %v729_v63  ;;  %v653_v11 = vsel %vm578_vm3, %v1667_v58, 0.0  ;;  %vm577_vm6 = vcmp.eq.s32.totalorder %v1599_v7, %v1670_v59  ;;  %vm361_vm7 = vcmp.eq.s32.totalorder %v1599_v7, %v1643_v31 }
  0xd6   : > { %v879_v12 = vsel %vm363_vm12, %v1620_v15, %v804_v53  ;;  %v728_v37 = vsel %vm506_vm1, %v1679_v1, %v653_v11  ;;  %v652_v54 = vsel %vm577_vm6, %v1664_v57, 0.0  ;;  %vm360_vm8 = vcmp.eq.s32.totalorder %v1606_v9, %v1646_v35 }
  0xd7   : > { %954 = vmatpush2.msra.mxu0 %v879_v12  ;;  %v803_v19 = vsel %vm434_vm2, %v1682_v2, %v728_v37  ;;  %v727_v33 = vsel %vm505_vm5, %v1676_v0, %v652_v54  ;;  %vm504_vm9 = vcmp.eq.s32.totalorder %v1606_v9, %v1661_v55  ;;  %vm432_vm10 = vcmp.eq.s32.totalorder %v1606_v9, %v1655_v51 }
  0xd8   : > { %v878_v6 = vsel %vm362_vm0, %v1636_v23, %v803_v19  ;;  %v802_v13 = vsel %vm433_vm4, %v1649_v39, %v727_v33  ;;  %vm576_vm11 = vcmp.eq.s32.totalorder %v1606_v9, %v1673_v61  ;;  %vm359_vm12 = vcmp.eq.s32.totalorder %v1606_v9, %v1643_v31 }
  0xd9   : > { %955 = vmatprep.subr.mxu0 %v878_v6  ;;  %v877_v20 = vsel %vm361_vm7, %v1620_v15, %v802_v13  ;;  %v651_v26 = vsel %vm576_vm11, %v1667_v58, 0.0  ;;  %vm503_vm13 = vcmp.eq.s32.totalorder %v1606_v9, %v1658_v52  ;;  %vm431_vm14 = vcmp.eq.s32.totalorder %v1606_v9, %v1652_v47 }
  0xda   : > { %956 = vmatpush2.msra.mxu0 %v877_v20  ;;  %v726_v7 = vsel %vm504_vm9, %v1679_v1, %v651_v26  ;;  %vm575_vm15 = vcmp.eq.s32.totalorder %v1606_v9, %v1670_v59  ;;  %vm430_vm0 = vcmp.eq.s32.totalorder %v1613_v14, %v1655_v51  ;;  %vm502_vm1 = vcmp.eq.s32.totalorder %v1613_v14, %v1661_v55 }
  0xdb   : > { %v801_v21 = vsel %vm432_vm10, %v1682_v2, %v726_v7  ;;  %v650_v22 = vsel %vm575_vm15, %v1664_v57, 0.0  ;;  %vm574_vm2 = vcmp.eq.s32.totalorder %v1613_v14, %v1673_v61  ;;  %vm358_vm3 = vcmp.eq.s32.totalorder %v1613_v14, %v1646_v35 }
  0xdc   : > { %v876_v27 = vsel %vm360_vm8, %v1636_v23, %v801_v21  ;;  %v725_v48 = vsel %vm503_vm13, %v1676_v0, %v650_v22  ;;  %v649_v42 = vsel %vm574_vm2, %v1667_v58, 0.0  ;;  %vm357_vm4 = vcmp.eq.s32.totalorder %v1613_v14, %v1643_v31 }
  0xdd   : > { %957 = vmatprep.subr.mxu0 %v876_v27  ;;  %v800_v43 = vsel %vm431_vm14, %v1649_v39, %v725_v48  ;;  %v724_v56 = vsel %vm502_vm1, %v1679_v1, %v649_v42  ;;  %vm501_vm5 = vcmp.eq.s32.totalorder %v1613_v14, %v1658_v52  ;;  %vm429_vm6 = vcmp.eq.s32.totalorder %v1613_v14, %v1652_v47 }
  0xde   : > { %v875_v44 = vsel %vm359_vm12, %v1620_v15, %v800_v43  ;;  %v799_v49 = vsel %vm430_vm0, %v1682_v2, %v724_v56  ;;  %vm573_vm7 = vcmp.eq.s32.totalorder %v1613_v14, %v1670_v59  ;;  %vm356_vm8 = vcmp.eq.s32.totalorder %v1623_v16, %v1646_v35 }
  0xdf   : > { %958 = vmatpush2.msra.mxu0 %v875_v44  ;;  %v874_v24 = vsel %vm358_vm3, %v1636_v23, %v799_v49  ;;  %v648_v30 = vsel %vm573_vm7, %v1664_v57, 0.0  ;;  %vm500_vm9 = vcmp.eq.s32.totalorder %v1623_v16, %v1661_v55  ;;  %vm428_vm10 = vcmp.eq.s32.totalorder %v1623_v16, %v1655_v51 }
  0xe0   : > { %959 = vmatprep.subr.mxu0 %v874_v24  ;;  %v723_v9 = vsel %vm501_vm5, %v1676_v0, %v648_v30  ;;  %vm572_vm11 = vcmp.eq.s32.totalorder %v1623_v16, %v1673_v61  ;;  %vm427_vm12 = vcmp.eq.s32.totalorder %v1623_v16, %v1652_v47  ;;  %vm499_vm13 = vcmp.eq.s32.totalorder %v1623_v16, %v1658_v52 }
  0xe1   : > { %v798_v38 = vsel %vm429_vm6, %v1649_v39, %v723_v9  ;;  %v647_v25 = vsel %vm572_vm11, %v1667_v58, 0.0  ;;  %vm571_vm14 = vcmp.eq.s32.totalorder %v1623_v16, %v1670_v59  ;;  %vm355_vm15 = vcmp.eq.s32.totalorder %v1623_v16, %v1643_v31 }
  0xe2   : > { %v873_v34 = vsel %vm357_vm4, %v1620_v15, %v798_v38  ;;  %v722_v60 = vsel %vm500_vm9, %v1679_v1, %v647_v25  ;;  %v646_v45 = vsel %vm571_vm14, %v1664_v57, 0.0  ;;  %vm354_vm0 = vcmp.eq.s32.totalorder %v1626_v17, %v1646_v35 }
  0xe3   : > { %960 = vmatpush2.msra.mxu0 %v873_v34  ;;  %v797_v3 = vsel %vm428_vm10, %v1682_v2, %v722_v60  ;;  %v721_v4 = vsel %vm499_vm13, %v1676_v0, %v646_v45  ;;  %vm498_vm1 = vcmp.eq.s32.totalorder %v1626_v17, %v1661_v55  ;;  %vm426_vm2 = vcmp.eq.s32.totalorder %v1626_v17, %v1655_v51 }
  0xe4   : > { %v872_v14 = vsel %vm356_vm8, %v1636_v23, %v797_v3  ;;  %v796_v62 = vsel %vm427_vm12, %v1649_v39, %v721_v4  ;;  %vm570_vm3 = vcmp.eq.s32.totalorder %v1626_v17, %v1673_v61  ;;  %vm353_vm4 = vcmp.eq.s32.totalorder %v1626_v17, %v1643_v31 }
  0xe5   : > { %961 = vmatprep.subr.mxu0 %v872_v14  ;;  %v871_v28 = vsel %vm355_vm15, %v1620_v15, %v796_v62  ;;  %v645_v46 = vsel %vm570_vm3, %v1667_v58, 0.0  ;;  %vm497_vm5 = vcmp.eq.s32.totalorder %v1626_v17, %v1658_v52  ;;  %vm425_vm6 = vcmp.eq.s32.totalorder %v1626_v17, %v1652_v47 }
  0xe6   : > { %962 = vmatpush2.msra.mxu0 %v871_v28  ;;  %v720_v16 = vsel %vm498_vm1, %v1679_v1, %v645_v46  ;;  %vm569_vm7 = vcmp.eq.s32.totalorder %v1626_v17, %v1670_v59  ;;  %vm424_vm8 = vcmp.eq.s32.totalorder %v1629_v18, %v1655_v51  ;;  %vm496_vm9 = vcmp.eq.s32.totalorder %v1629_v18, %v1661_v55 }
  0xe7   : > { %v795_v5 = vsel %vm426_vm2, %v1682_v2, %v720_v16  ;;  %v644_v50 = vsel %vm569_vm7, %v1664_v57, 0.0  ;;  %vm568_vm10 = vcmp.eq.s32.totalorder %v1629_v18, %v1673_v61  ;;  %vm352_vm11 = vcmp.eq.s32.totalorder %v1629_v18, %v1646_v35 }
  0xe8   : > { %v870_v40 = vsel %vm354_vm0, %v1636_v23, %v795_v5  ;;  %v719_v10 = vsel %vm497_vm5, %v1676_v0, %v644_v50  ;;  %v643_v32 = vsel %vm568_vm10, %v1667_v58, 0.0  ;;  %vm423_vm12 = vcmp.eq.s32.totalorder %v1629_v18, %v1652_v47 }
  0xe9   : > { %963 = vmatprep.subr.mxu0 %v870_v40  ;;  %v794_v36 = vsel %vm425_vm6, %v1649_v39, %v719_v10  ;;  %v718_v55 = vsel %vm496_vm9, %v1679_v1, %v643_v32  ;;  %vm495_vm13 = vcmp.eq.s32.totalorder %v1629_v18, %v1658_v52  ;;  %vm567_vm14 = vcmp.eq.s32.totalorder %v1629_v18, %v1670_v59 }
  0xea   : > { %v869_v61 = vsel %vm353_vm4, %v1620_v15, %v794_v36  ;;  %v793_v35 = vsel %vm424_vm8, %v1682_v2, %v718_v55  ;;  %v901_v58 = vcombine.high %v899_v8, %v899_v8  ;;  %vm351_vm15 = vcmp.eq.s32.totalorder %v1629_v18, %v1643_v31 }
  0xeb   : > { %964 = vmatpush2.msra.mxu0 %v869_v61  ;;  %v868_v47 = vsel %vm352_vm11, %v1636_v23, %v793_v35  ;;  %v642_v17 = vsel %vm567_vm14, %v1664_v57, 0.0 }
  0xec   : > { %965 = vmatprep.subr.mxu0 %v868_v47  ;;  %v717_v52 = vsel %vm495_vm13, %v1676_v0, %v642_v17  ;;  %967 = vmatprep.mubr.f32.mxu0 %v901_v58 }
  0xed   : > { %v792_v51 = vsel %vm423_vm12, %v1649_v39, %v717_v52 }
  0xee   : > { %v867_v59 = vsel %vm351_vm15, %v1620_v15, %v792_v51 }
  0xef   : > { %966 = vmatpush2.msra.mxu0 %v867_v59 }
  0xf0   : > { %968 = vmatmul.mubr.f32.vlgmr.msra.gmra.mxu0 %v899_v8 }
 0x1b0   : > { %v969_v1 = vpop.f32.mrf.mxu0 }
 0x1b2   : > { %v971_v23 = vpop.f32.mrf.mxu0 }
 0x1b3   : > { %v976_v18 = vcombine.low %v969_v1, %v971_v23 }
 0x1b5   : > { %978 = vst [vmem:[%s199_s18] sm:$0xff] %v976_v18 }
 0x1b6   : > { %1267 = shalt.err (!%p1264_p3)
}
 0x1b7   : > { %s1268_s10 = scalar_lea.hbm %s994_s13, 128  ;;  %s1272_s28 = scalar_lea.hbm %s2624_s3, 256 }
 0x1b8   : > { %p1269_p5 = scmp.ne.s32.totalorder %s994_s13, %s1268_s10  ;;  %p1273_p4 = scmp.lt.s32.totalorder %s994_s13, %s2624_s3 }
 0x1b9   : > { %p1274_p10 = scmp.lt.s32.totalorder %s1272_s28, %s1268_s10 }
 0x1ba   : > { %p1270_p7 = pnand %p1269_p5, %p1455_p0 }
 0x1bb   : > { %p1275_p9 = por %p1274_p10, %p1273_p4 }
 0x1bc   : > { %p1271_p6 = pneg %p1270_p7 }
 0x1be   : > { %p1276_p1 = pnand %p1275_p9, %p1271_p6 }
 0x1c0   : > { %1279 = shalt.err (!%p1276_p1)
}
 0x1c1   : > { %1123 = dma.vmem_to_hbm [thread:$0]  (%p1455_p0), %s997_s6, 128, %s994_s13, %s980_s26  }
 0x1c2 PF: > { %s1008_s5 = sand.u32 1, %s1320_s15   ;;  %p2643_p8 = scmp.ne.s32.totalorder %s2629_s25, 0 }
 0x1c3   : > { %p2644_p13 = scmp.ge.s32.totalorder %s1340_s20, 2  ;;  %s1009_s24 = scalar_lea.sflag [#allocation6], %s1008_s5 }
 0x1c5   : > { %p1134_p11 = pnand %p2644_p13, %p2643_p8 }
 0x1c7   : > { %p1135_p2 = pneg %p1134_p11 }
 0x1c9   : > { %1315 = dma.done.wait (%p1135_p2), %s1009_s24, 128  }
 0x1ca   : > { %1317 = vsyncadd (%p1135_p2), %s1009_s24, 4294967168  ;;  %s24_s20 = sadd.s32 1, %s1340_s20   ;;  %s2645_s15 = smov %s1324_s16 }
 0x1cb   : > { %p21_p12 = scmp.ge.s32.totalorder %s24_s20, 4   ;;  %s2646_s16 = smov %s1328_s17 }
 0x1cc   : > { %s2647_s17 = smov %s1461_s11  ;;  %s2648_s18 = smov %s1336_s19 }
 0x1cd   : > { %s2649_s19 = smov %s2651_s30  ;;  %23 = sbr.rel (!%p21_p12) target bundleno = 12 (0xc), region = 80 }
 0x1d2   :  { %1014 = vsyncpa [#allocation5], 1 }
 0x1d3   :  { %1016 = vsyncpa [#allocation5 + $0x1], 1 }
 0x1d4   :  { %1017 = vsyncpa [#allocation8], 1 }
 0x1d5   :  { %1019 = vsyncpa [#allocation8 + $0x1], 1 }
 0x1d6   :  { %1020 = vsyncpa [#allocation6], 1 }
 0x1d7   :  { %1022 = vsyncpa [#allocation6 + $0x1], 1 }

</bundles_post_ra>
